<compile_context>
chip_gen: v7x
topology: tpu7x:2x2x1
jax: 0.10.0
libtpu: 0.0.40
codegen_flags: <defaults>
</compile_context>

<pallas_src>
import jax
import jax.numpy as jnp
import numpy as np
from jax import lax
from jax.experimental import pallas as pl
from jax.experimental.pallas import tpu as pltpu

# Module spec is vocab=5000, embed=256, hidden=512 — scaled down to small,
# lane/sublane-friendly shapes for this synthetic run.
VOCAB = 256       # multiple of 128 -> lane-dense FC output (no masked stores)
EMBED = 128       # lane-aligned K dim of the input projection
HIDDEN = 128      # gate slices land on 128-lane boundaries
BATCH = 2
B_PAD = 8         # batch padded to a full 8-sublane tile inside the kernel
SEQLEN = 8


def lstm_fused_kernel(tokens_ref,                                   # SMEM (B, T) int32
                      emb_ref, wih_ref, whh_ref, b_ref, wfc_ref, bfc_ref,
                      out_ref,                                      # VMEM (B_PAD, V)
                      x_sc, gates_sc):                              # VMEM scratch
    """Single grid step: gather + bulk input projection + unrolled LSTM + FC."""
    B, T = tokens_ref.shape
    BP = x_sc.shape[0] // T          # padded batch (sublane multiple)
    H = whh_ref.shape[0]

    # ---- Phase 1: embedding gather into time-major rows (t*BP + b) ----
    x_sc[...] = jnp.zeros_like(x_sc)            # padded batch rows stay zero
    for t in range(T):                          # static unroll (T*B = 16 rows)
        for b in range(B):
            tok = tokens_ref[b, t]              # scalar read from SMEM
            row = t * BP + b
            x_sc[row:row + 1, :] = emb_ref[pl.ds(tok, 1), :]

    # ---- Phase 2: hoisted input projection for ALL time steps at once ----
    # (T*BP, E) @ (E, 4H) + bias  — one big MXU matmul off the serial path.
    gates_sc[...] = (
        jnp.dot(x_sc[...], wih_ref[...], preferred_element_type=jnp.float32)
        + b_ref[...])

    # ---- Phase 3: sequential recurrence; only h @ W_hh^T per step ----
    def step(t, carry):
        h, c = carry
        base = pl.multiple_of(t * BP, BP)
        g = (gates_sc[pl.ds(base, BP), :]
             + jnp.dot(h, whh_ref[...], preferred_element_type=jnp.float32))
        # PyTorch gate order: i, f, g, o — slices are 128-lane aligned.
        i_g = jax.nn.sigmoid(g[:, 0 * H:1 * H])
        f_g = jax.nn.sigmoid(g[:, 1 * H:2 * H])
        g_g = jnp.tanh(g[:, 2 * H:3 * H])
        o_g = jax.nn.sigmoid(g[:, 3 * H:4 * H])
        c_new = f_g * c + i_g * g_g
        h_new = o_g * jnp.tanh(c_new)
        return (h_new, c_new)

    h0 = jnp.zeros((BP, H), jnp.float32)
    c0 = jnp.zeros((BP, H), jnp.float32)
    h_last, _ = lax.fori_loop(0, T, step, (h0, c0), unroll=True)

    # ---- Phase 4: final Linear on the last hidden state (x[:, -1, :]) ----
    out_ref[...] = (
        jnp.dot(h_last, wfc_ref[...], preferred_element_type=jnp.float32)
        + bfc_ref[...]).astype(out_ref.dtype)


def language_diffusion_forward(tokens, params):
    B, T = tokens.shape
    assert B <= B_PAD
    V, E = params["embedding"].shape
    H = params["w_hh"].shape[1]

    # Param preprocessing (one-time): pre-transpose so the kernel does plain
    # row-major MXU matmuls; fuse the two LSTM biases.
    wih_t = jnp.transpose(params["w_ih"])                 # (E, 4H)
    whh_t = jnp.transpose(params["w_hh"])                 # (H, 4H)
    b = (params["b_ih"] + params["b_hh"])[None, :]        # (1, 4H)
    wfc_t = jnp.transpose(params["w_fc"])                 # (H, V)
    bfc = params["b_fc"][None, :]                         # (1, V)

    grid_spec = pltpu.PrefetchScalarGridSpec(
        num_scalar_prefetch=1,                 # tokens -> SMEM
        grid=(1,),                             # single grid step, no pipelining
        in_specs=[
            pl.BlockSpec((V, E), lambda i, tok: (0, 0)),       # embedding table
            pl.BlockSpec((E, 4 * H), lambda i, tok: (0, 0)),   # W_ih^T
            pl.BlockSpec((H, 4 * H), lambda i, tok: (0, 0)),   # W_hh^T
            pl.BlockSpec((1, 4 * H), lambda i, tok: (0, 0)),   # fused LSTM bias
            pl.BlockSpec((H, V), lambda i, tok: (0, 0)),       # W_fc^T
            pl.BlockSpec((1, V), lambda i, tok: (0, 0)),       # fc bias
        ],
        out_specs=pl.BlockSpec((B_PAD, V), lambda i, tok: (0, 0)),
        scratch_shapes=[
            pltpu.VMEM((T * B_PAD, E), jnp.float32),        # gathered X
            pltpu.VMEM((T * B_PAD, 4 * H), jnp.float32),    # X @ W_ih^T + b
        ],
    )

    out_padded = pl.pallas_call(
        lstm_fused_kernel,
        out_shape=jax.ShapeDtypeStruct((B_PAD, V), jnp.float32),
        grid_spec=grid_spec,
    )(tokens, params["embedding"], wih_t, whh_t, b, wfc_t, bfc)

    return out_padded[:B]                       # drop padded batch rows


def reference_forward(tokens, params):
    """Pure-JAX reference matching PyTorch nn.LSTM semantics."""
    emb = params["embedding"][tokens]           # (B, T, E)
    B = emb.shape[0]
    H = params["w_hh"].shape[1]

    def step(carry, x_t):
        h, c = carry
        gates = (x_t @ params["w_ih"].T + h @ params["w_hh"].T
                 + params["b_ih"] + params["b_hh"])
        i, f, g, o = jnp.split(gates, 4, axis=-1)
        i = jax.nn.sigmoid(i)
        f = jax.nn.sigmoid(f)
        g = jnp.tanh(g)
        o = jax.nn.sigmoid(o)
        c = f * c + i * g
        h = o * jnp.tanh(c)
        return (h, c), h

    (h_last, _), _ = lax.scan(
        step,
        (jnp.zeros((B, H), jnp.float32), jnp.zeros((B, H), jnp.float32)),
        jnp.transpose(emb, (1, 0, 2)),
    )
    return h_last @ params["w_fc"].T + params["b_fc"]


def init_params(key, vocab, embed, hidden):
    ks = jax.random.split(key, 7)
    k_lstm = 1.0 / np.sqrt(hidden)
    k_fc = 1.0 / np.sqrt(hidden)
    return {
        # nn.Embedding default: N(0, 1)
        "embedding": jax.random.normal(ks[0], (vocab, embed), jnp.float32),
        # nn.LSTM default: U(-1/sqrt(H), 1/sqrt(H)), gate order i,f,g,o
        "w_ih": jax.random.uniform(ks[1], (4 * hidden, embed), jnp.float32,
                                   -k_lstm, k_lstm),
        "w_hh": jax.random.uniform(ks[2], (4 * hidden, hidden), jnp.float32,
                                   -k_lstm, k_lstm),
        "b_ih": jax.random.uniform(ks[3], (4 * hidden,), jnp.float32,
                                   -k_lstm, k_lstm),
        "b_hh": jax.random.uniform(ks[4], (4 * hidden,), jnp.float32,
                                   -k_lstm, k_lstm),
        # nn.Linear default: U(-1/sqrt(fan_in), 1/sqrt(fan_in))
        "w_fc": jax.random.uniform(ks[5], (vocab, hidden), jnp.float32,
                                   -k_fc, k_fc),
        "b_fc": jax.random.uniform(ks[6], (vocab,), jnp.float32, -k_fc, k_fc),
    }


if __name__ == "__main__":
    key = jax.random.PRNGKey(0)
    k_params, k_tokens = jax.random.split(key)

    params = init_params(k_params, VOCAB, EMBED, HIDDEN)
    tokens = jax.random.randint(k_tokens, (BATCH, SEQLEN), 0, VOCAB,
                                dtype=jnp.int32)

    out = language_diffusion_forward(tokens, params)
    out = jax.block_until_ready(out)

    ref = jax.block_until_ready(reference_forward(tokens, params))
    assert out.shape == (BATCH, VOCAB) and out.dtype == jnp.float32
    np.testing.assert_allclose(np.asarray(out), np.asarray(ref),
                               rtol=1e-4, atol=1e-4)

    print("KERNEL_OK")
</pallas_src>

<mosaic_0001>
module attributes {stable_mosaic.version = 11 : i64} {
  func.func @lstm_fused_kernel(%arg0: i32, %arg1: memref<2x8xi32, #tpu.memory_space<smem>>, %arg2: memref<256x128xf32, #tpu.memory_space<vmem>>, %arg3: memref<128x512xf32, #tpu.memory_space<vmem>>, %arg4: memref<128x512xf32, #tpu.memory_space<vmem>>, %arg5: memref<1x512xf32, #tpu.memory_space<vmem>>, %arg6: memref<128x256xf32, #tpu.memory_space<vmem>>, %arg7: memref<1x256xf32, #tpu.memory_space<vmem>>, %arg8: memref<8x256xf32, #tpu.memory_space<vmem>>, %arg9: memref<64x128xf32, #tpu.memory_space<vmem>>, %arg10: memref<64x512xf32, #tpu.memory_space<vmem>>) attributes {dimension_semantics = [#tpu.dimension_semantics<arbitrary>], iteration_bounds = array<i64: 1>, scalar_prefetch = 1 : i64, scratch_operands = 2 : i64, tpu.core_type = #tpu.core_type<tc>, window_params = [{pipeline_mode = #tpu.pipeline_mode<synchronous>, transform_indices = @transform_0, window_bounds = array<i64: 256, 128>}, {pipeline_mode = #tpu.pipeline_mode<synchronous>, transform_indices = @transform_1, window_bounds = array<i64: 128, 512>}, {pipeline_mode = #tpu.pipeline_mode<synchronous>, transform_indices = @transform_2, window_bounds = array<i64: 128, 512>}, {pipeline_mode = #tpu.pipeline_mode<synchronous>, transform_indices = @transform_3, window_bounds = array<i64: 1, 512>}, {pipeline_mode = #tpu.pipeline_mode<synchronous>, transform_indices = @transform_4, window_bounds = array<i64: 128, 256>}, {pipeline_mode = #tpu.pipeline_mode<synchronous>, transform_indices = @transform_5, window_bounds = array<i64: 1, 256>}, {pipeline_mode = #tpu.pipeline_mode<synchronous>, transform_indices = @transform_6, window_bounds = array<i64: 8, 256>}]} {
    %cst = arith.constant 0.000000e+00 : f32
    %0 = vector.broadcast %cst : f32 to vector<64x128xf32>
    %c0 = arith.constant 0 : index
    %c0_0 = arith.constant 0 : index
    %1 = vector.load %arg9[%c0, %c0_0] : memref<64x128xf32, #tpu.memory_space<vmem>>, vector<64x128xf32>
    tpu.vector_store %arg9[%c0, %c0_0], %0 {strides = array<i32>} : memref<64x128xf32, #tpu.memory_space<vmem>>, vector<64x128xf32>,
    %c0_1 = arith.constant 0 : index
    %c0_2 = arith.constant 0 : index
    %2 = memref.load %arg1[%c0_1, %c0_2] : memref<2x8xi32, #tpu.memory_space<smem>>
    %3 = arith.index_cast %2 : i32 to index
    %c0_3 = arith.constant 0 : index
    %4 = vector.load %arg2[%3, %c0_3] : memref<256x128xf32, #tpu.memory_space<vmem>>, vector<1x128xf32>
    %c0_4 = arith.constant 0 : index
    %c0_5 = arith.constant 0 : index
    %5 = vector.load %arg9[%c0_4, %c0_5] : memref<64x128xf32, #tpu.memory_space<vmem>>, vector<1x128xf32>
    tpu.vector_store %arg9[%c0_4, %c0_5], %4 {strides = array<i32>} : memref<64x128xf32, #tpu.memory_space<vmem>>, vector<1x128xf32>,
    %c1 = arith.constant 1 : index
    %c0_6 = arith.constant 0 : index
    %6 = memref.load %arg1[%c1, %c0_6] : memref<2x8xi32, #tpu.memory_space<smem>>
    %7 = arith.index_cast %6 : i32 to index
    %c0_7 = arith.constant 0 : index
    %8 = vector.load %arg2[%7, %c0_7] : memref<256x128xf32, #tpu.memory_space<vmem>>, vector<1x128xf32>
    %c1_8 = arith.constant 1 : index
    %c0_9 = arith.constant 0 : index
    %9 = vector.load %arg9[%c1_8, %c0_9] : memref<64x128xf32, #tpu.memory_space<vmem>>, vector<1x128xf32>
    tpu.vector_store %arg9[%c1_8, %c0_9], %8 {strides = array<i32>} : memref<64x128xf32, #tpu.memory_space<vmem>>, vector<1x128xf32>,
    %c0_10 = arith.constant 0 : index
    %c1_11 = arith.constant 1 : index
    %10 = memref.load %arg1[%c0_10, %c1_11] : memref<2x8xi32, #tpu.memory_space<smem>>
    %11 = arith.index_cast %10 : i32 to index
    %c0_12 = arith.constant 0 : index
    %12 = vector.load %arg2[%11, %c0_12] : memref<256x128xf32, #tpu.memory_space<vmem>>, vector<1x128xf32>
    %c8 = arith.constant 8 : index
    %c0_13 = arith.constant 0 : index
    %13 = vector.load %arg9[%c8, %c0_13] : memref<64x128xf32, #tpu.memory_space<vmem>>, vector<1x128xf32>
    tpu.vector_store %arg9[%c8, %c0_13], %12 {strides = array<i32>} : memref<64x128xf32, #tpu.memory_space<vmem>>, vector<1x128xf32>,
    %c1_14 = arith.constant 1 : index
    %c1_15 = arith.constant 1 : index
    %14 = memref.load %arg1[%c1_14, %c1_15] : memref<2x8xi32, #tpu.memory_space<smem>>
    %15 = arith.index_cast %14 : i32 to index
    %c0_16 = arith.constant 0 : index
    %16 = vector.load %arg2[%15, %c0_16] : memref<256x128xf32, #tpu.memory_space<vmem>>, vector<1x128xf32>
    %c9 = arith.constant 9 : index
    %c0_17 = arith.constant 0 : index
    %17 = vector.load %arg9[%c9, %c0_17] : memref<64x128xf32, #tpu.memory_space<vmem>>, vector<1x128xf32>
    tpu.vector_store %arg9[%c9, %c0_17], %16 {strides = array<i32>} : memref<64x128xf32, #tpu.memory_space<vmem>>, vector<1x128xf32>,
    %c0_18 = arith.constant 0 : index
    %c2 = arith.constant 2 : index
    %18 = memref.load %arg1[%c0_18, %c2] : memref<2x8xi32, #tpu.memory_space<smem>>
    %19 = arith.index_cast %18 : i32 to index
    %c0_19 = arith.constant 0 : index
    %20 = vector.load %arg2[%19, %c0_19] : memref<256x128xf32, #tpu.memory_space<vmem>>, vector<1x128xf32>
    %c16 = arith.constant 16 : index
    %c0_20 = arith.constant 0 : index
    %21 = vector.load %arg9[%c16, %c0_20] : memref<64x128xf32, #tpu.memory_space<vmem>>, vector<1x128xf32>
    tpu.vector_store %arg9[%c16, %c0_20], %20 {strides = array<i32>} : memref<64x128xf32, #tpu.memory_space<vmem>>, vector<1x128xf32>,
    %c1_21 = arith.constant 1 : index
    %c2_22 = arith.constant 2 : index
    %22 = memref.load %arg1[%c1_21, %c2_22] : memref<2x8xi32, #tpu.memory_space<smem>>
    %23 = arith.index_cast %22 : i32 to index
    %c0_23 = arith.constant 0 : index
    %24 = vector.load %arg2[%23, %c0_23] : memref<256x128xf32, #tpu.memory_space<vmem>>, vector<1x128xf32>
    %c17 = arith.constant 17 : index
    %c0_24 = arith.constant 0 : index
    %25 = vector.load %arg9[%c17, %c0_24] : memref<64x128xf32, #tpu.memory_space<vmem>>, vector<1x128xf32>
    tpu.vector_store %arg9[%c17, %c0_24], %24 {strides = array<i32>} : memref<64x128xf32, #tpu.memory_space<vmem>>, vector<1x128xf32>,
    %c0_25 = arith.constant 0 : index
    %c3 = arith.constant 3 : index
    %26 = memref.load %arg1[%c0_25, %c3] : memref<2x8xi32, #tpu.memory_space<smem>>
    %27 = arith.index_cast %26 : i32 to index
    %c0_26 = arith.constant 0 : index
    %28 = vector.load %arg2[%27, %c0_26] : memref<256x128xf32, #tpu.memory_space<vmem>>, vector<1x128xf32>
    %c24 = arith.constant 24 : index
    %c0_27 = arith.constant 0 : index
    %29 = vector.load %arg9[%c24, %c0_27] : memref<64x128xf32, #tpu.memory_space<vmem>>, vector<1x128xf32>
    tpu.vector_store %arg9[%c24, %c0_27], %28 {strides = array<i32>} : memref<64x128xf32, #tpu.memory_space<vmem>>, vector<1x128xf32>,
    %c1_28 = arith.constant 1 : index
    %c3_29 = arith.constant 3 : index
    %30 = memref.load %arg1[%c1_28, %c3_29] : memref<2x8xi32, #tpu.memory_space<smem>>
    %31 = arith.index_cast %30 : i32 to index
    %c0_30 = arith.constant 0 : index
    %32 = vector.load %arg2[%31, %c0_30] : memref<256x128xf32, #tpu.memory_space<vmem>>, vector<1x128xf32>
    %c25 = arith.constant 25 : index
    %c0_31 = arith.constant 0 : index
    %33 = vector.load %arg9[%c25, %c0_31] : memref<64x128xf32, #tpu.memory_space<vmem>>, vector<1x128xf32>
    tpu.vector_store %arg9[%c25, %c0_31], %32 {strides = array<i32>} : memref<64x128xf32, #tpu.memory_space<vmem>>, vector<1x128xf32>,
    %c0_32 = arith.constant 0 : index
    %c4 = arith.constant 4 : index
    %34 = memref.load %arg1[%c0_32, %c4] : memref<2x8xi32, #tpu.memory_space<smem>>
    %35 = arith.index_cast %34 : i32 to index
    %c0_33 = arith.constant 0 : index
    %36 = vector.load %arg2[%35, %c0_33] : memref<256x128xf32, #tpu.memory_space<vmem>>, vector<1x128xf32>
    %c32 = arith.constant 32 : index
    %c0_34 = arith.constant 0 : index
    %37 = vector.load %arg9[%c32, %c0_34] : memref<64x128xf32, #tpu.memory_space<vmem>>, vector<1x128xf32>
    tpu.vector_store %arg9[%c32, %c0_34], %36 {strides = array<i32>} : memref<64x128xf32, #tpu.memory_space<vmem>>, vector<1x128xf32>,
    %c1_35 = arith.constant 1 : index
    %c4_36 = arith.constant 4 : index
    %38 = memref.load %arg1[%c1_35, %c4_36] : memref<2x8xi32, #tpu.memory_space<smem>>
    %39 = arith.index_cast %38 : i32 to index
    %c0_37 = arith.constant 0 : index
    %40 = vector.load %arg2[%39, %c0_37] : memref<256x128xf32, #tpu.memory_space<vmem>>, vector<1x128xf32>
    %c33 = arith.constant 33 : index
    %c0_38 = arith.constant 0 : index
    %41 = vector.load %arg9[%c33, %c0_38] : memref<64x128xf32, #tpu.memory_space<vmem>>, vector<1x128xf32>
    tpu.vector_store %arg9[%c33, %c0_38], %40 {strides = array<i32>} : memref<64x128xf32, #tpu.memory_space<vmem>>, vector<1x128xf32>,
    %c0_39 = arith.constant 0 : index
    %c5 = arith.constant 5 : index
    %42 = memref.load %arg1[%c0_39, %c5] : memref<2x8xi32, #tpu.memory_space<smem>>
    %43 = arith.index_cast %42 : i32 to index
    %c0_40 = arith.constant 0 : index
    %44 = vector.load %arg2[%43, %c0_40] : memref<256x128xf32, #tpu.memory_space<vmem>>, vector<1x128xf32>
    %c40 = arith.constant 40 : index
    %c0_41 = arith.constant 0 : index
    %45 = vector.load %arg9[%c40, %c0_41] : memref<64x128xf32, #tpu.memory_space<vmem>>, vector<1x128xf32>
    tpu.vector_store %arg9[%c40, %c0_41], %44 {strides = array<i32>} : memref<64x128xf32, #tpu.memory_space<vmem>>, vector<1x128xf32>,
    %c1_42 = arith.constant 1 : index
    %c5_43 = arith.constant 5 : index
    %46 = memref.load %arg1[%c1_42, %c5_43] : memref<2x8xi32, #tpu.memory_space<smem>>
    %47 = arith.index_cast %46 : i32 to index
    %c0_44 = arith.constant 0 : index
    %48 = vector.load %arg2[%47, %c0_44] : memref<256x128xf32, #tpu.memory_space<vmem>>, vector<1x128xf32>
    %c41 = arith.constant 41 : index
    %c0_45 = arith.constant 0 : index
    %49 = vector.load %arg9[%c41, %c0_45] : memref<64x128xf32, #tpu.memory_space<vmem>>, vector<1x128xf32>
    tpu.vector_store %arg9[%c41, %c0_45], %48 {strides = array<i32>} : memref<64x128xf32, #tpu.memory_space<vmem>>, vector<1x128xf32>,
    %c0_46 = arith.constant 0 : index
    %c6 = arith.constant 6 : index
    %50 = memref.load %arg1[%c0_46, %c6] : memref<2x8xi32, #tpu.memory_space<smem>>
    %51 = arith.index_cast %50 : i32 to index
    %c0_47 = arith.constant 0 : index
    %52 = vector.load %arg2[%51, %c0_47] : memref<256x128xf32, #tpu.memory_space<vmem>>, vector<1x128xf32>
    %c48 = arith.constant 48 : index
    %c0_48 = arith.constant 0 : index
    %53 = vector.load %arg9[%c48, %c0_48] : memref<64x128xf32, #tpu.memory_space<vmem>>, vector<1x128xf32>
    tpu.vector_store %arg9[%c48, %c0_48], %52 {strides = array<i32>} : memref<64x128xf32, #tpu.memory_space<vmem>>, vector<1x128xf32>,
    %c1_49 = arith.constant 1 : index
    %c6_50 = arith.constant 6 : index
    %54 = memref.load %arg1[%c1_49, %c6_50] : memref<2x8xi32, #tpu.memory_space<smem>>
    %55 = arith.index_cast %54 : i32 to index
    %c0_51 = arith.constant 0 : index
    %56 = vector.load %arg2[%55, %c0_51] : memref<256x128xf32, #tpu.memory_space<vmem>>, vector<1x128xf32>
    %c49 = arith.constant 49 : index
    %c0_52 = arith.constant 0 : index
    %57 = vector.load %arg9[%c49, %c0_52] : memref<64x128xf32, #tpu.memory_space<vmem>>, vector<1x128xf32>
    tpu.vector_store %arg9[%c49, %c0_52], %56 {strides = array<i32>} : memref<64x128xf32, #tpu.memory_space<vmem>>, vector<1x128xf32>,
    %c0_53 = arith.constant 0 : index
    %c7 = arith.constant 7 : index
    %58 = memref.load %arg1[%c0_53, %c7] : memref<2x8xi32, #tpu.memory_space<smem>>
    %59 = arith.index_cast %58 : i32 to index
    %c0_54 = arith.constant 0 : index
    %60 = vector.load %arg2[%59, %c0_54] : memref<256x128xf32, #tpu.memory_space<vmem>>, vector<1x128xf32>
    %c56 = arith.constant 56 : index
    %c0_55 = arith.constant 0 : index
    %61 = vector.load %arg9[%c56, %c0_55] : memref<64x128xf32, #tpu.memory_space<vmem>>, vector<1x128xf32>
    tpu.vector_store %arg9[%c56, %c0_55], %60 {strides = array<i32>} : memref<64x128xf32, #tpu.memory_space<vmem>>, vector<1x128xf32>,
    %c1_56 = arith.constant 1 : index
    %c7_57 = arith.constant 7 : index
    %62 = memref.load %arg1[%c1_56, %c7_57] : memref<2x8xi32, #tpu.memory_space<smem>>
    %63 = arith.index_cast %62 : i32 to index
    %c0_58 = arith.constant 0 : index
    %64 = vector.load %arg2[%63, %c0_58] : memref<256x128xf32, #tpu.memory_space<vmem>>, vector<1x128xf32>
    %c57 = arith.constant 57 : index
    %c0_59 = arith.constant 0 : index
    %65 = vector.load %arg9[%c57, %c0_59] : memref<64x128xf32, #tpu.memory_space<vmem>>, vector<1x128xf32>
    tpu.vector_store %arg9[%c57, %c0_59], %64 {strides = array<i32>} : memref<64x128xf32, #tpu.memory_space<vmem>>, vector<1x128xf32>,
    %c0_60 = arith.constant 0 : index
    %c0_61 = arith.constant 0 : index
    %66 = vector.load %arg9[%c0_60, %c0_61] : memref<64x128xf32, #tpu.memory_space<vmem>>, vector<64x128xf32>
    %c0_62 = arith.constant 0 : index
    %c0_63 = arith.constant 0 : index
    %67 = vector.load %arg3[%c0_62, %c0_63] : memref<128x512xf32, #tpu.memory_space<vmem>>, vector<128x512xf32>
    %cst_64 = arith.constant dense<0.000000e+00> : vector<64x512xf32>
    %68 = tpu.matmul %66, %67, %cst_64 {dimension_numbers = #tpu.dot_dimension_numbers<[1], [0], [0], [1], [0, 0, 1, 1], [], []>} : vector<64x128xf32>, vector<128x512xf32>, vector<64x512xf32> -> vector<64x512xf32>
    %c0_65 = arith.constant 0 : index
    %c0_66 = arith.constant 0 : index
    %69 = vector.load %arg5[%c0_65, %c0_66] : memref<1x512xf32, #tpu.memory_space<vmem>>, vector<1x512xf32>
    %70 = vector.broadcast %69 : vector<1x512xf32> to vector<64x512xf32>
    %71 = arith.addf %68, %70 : vector<64x512xf32>
    %c0_67 = arith.constant 0 : index
    %c0_68 = arith.constant 0 : index
    %72 = vector.load %arg10[%c0_67, %c0_68] : memref<64x512xf32, #tpu.memory_space<vmem>>, vector<64x512xf32>
    tpu.vector_store %arg10[%c0_67, %c0_68], %71 {strides = array<i32>} : memref<64x512xf32, #tpu.memory_space<vmem>>, vector<64x512xf32>,
    %cst_69 = arith.constant 0.000000e+00 : f32
    %73 = vector.broadcast %cst_69 : f32 to vector<8x128xf32>
    %cst_70 = arith.constant 0.000000e+00 : f32
    %74 = vector.broadcast %cst_70 : f32 to vector<8x128xf32>
    %c0_i32 = arith.constant 0 : i32
    %c8_i32 = arith.constant 8 : i32
    %75 = arith.muli %c0_i32, %c8_i32 : i32
    %76 = tpu.assume_multiple %75, 8 : i32
    %77 = arith.index_cast %76 : i32 to index
    %c0_71 = arith.constant 0 : index
    %78 = vector.load %arg10[%77, %c0_71] : memref<64x512xf32, #tpu.memory_space<vmem>>, vector<8x512xf32>
    %c0_72 = arith.constant 0 : index
    %c0_73 = arith.constant 0 : index
    %79 = vector.load %arg4[%c0_72, %c0_73] : memref<128x512xf32, #tpu.memory_space<vmem>>, vector<128x512xf32>
    %cst_74 = arith.constant dense<0.000000e+00> : vector<8x512xf32>
    %80 = tpu.matmul %73, %79, %cst_74 {dimension_numbers = #tpu.dot_dimension_numbers<[1], [0], [0], [1], [0, 0, 1, 1], [], []>} : vector<8x128xf32>, vector<128x512xf32>, vector<8x512xf32> -> vector<8x512xf32>
    %81 = arith.addf %78, %80 : vector<8x512xf32>
    %82 = vector.extract_strided_slice %81 {offsets = [0, 0], sizes = [8, 128], strides = [1, 1]} : vector<8x512xf32> to vector<8x128xf32>
    %83 = arith.negf %82 : vector<8x128xf32>
    %84 = math.exp %83 : vector<8x128xf32>
    %cst_75 = arith.constant 1.000000e+00 : f32
    %85 = vector.broadcast %cst_75 : f32 to vector<8x128xf32>
    %86 = arith.addf %85, %84 : vector<8x128xf32>
    %87 = arith.divf %85, %86 : vector<8x128xf32>
    %88 = vector.extract_strided_slice %81 {offsets = [0, 128], sizes = [8, 128], strides = [1, 1]} : vector<8x512xf32> to vector<8x128xf32>
    %89 = arith.negf %88 : vector<8x128xf32>
    %90 = math.exp %89 : vector<8x128xf32>
    %cst_76 = arith.constant 1.000000e+00 : f32
    %91 = vector.broadcast %cst_76 : f32 to vector<8x128xf32>
    %92 = arith.addf %91, %90 : vector<8x128xf32>
    %93 = arith.divf %91, %92 : vector<8x128xf32>
    %94 = vector.extract_strided_slice %81 {offsets = [0, 256], sizes = [8, 128], strides = [1, 1]} : vector<8x512xf32> to vector<8x128xf32>
    %95 = math.tanh %94 : vector<8x128xf32>
    %96 = vector.extract_strided_slice %81 {offsets = [0, 384], sizes = [8, 128], strides = [1, 1]} : vector<8x512xf32> to vector<8x128xf32>
    %97 = arith.negf %96 : vector<8x128xf32>
    %98 = math.exp %97 : vector<8x128xf32>
    %cst_77 = arith.constant 1.000000e+00 : f32
    %99 = vector.broadcast %cst_77 : f32 to vector<8x128xf32>
    %100 = arith.addf %99, %98 : vector<8x128xf32>
    %101 = arith.divf %99, %100 : vector<8x128xf32>
    %102 = arith.mulf %93, %74 : vector<8x128xf32>
    %103 = arith.mulf %87, %95 : vector<8x128xf32>
    %104 = arith.addf %102, %103 : vector<8x128xf32>
    %105 = math.tanh %104 : vector<8x128xf32>
    %106 = arith.mulf %101, %105 : vector<8x128xf32>
    %c1_i32 = arith.constant 1 : i32
    %c8_i32_78 = arith.constant 8 : i32
    %107 = arith.muli %c1_i32, %c8_i32_78 : i32
    %108 = tpu.assume_multiple %107, 8 : i32
    %109 = arith.index_cast %108 : i32 to index
    %c0_79 = arith.constant 0 : index
    %110 = vector.load %arg10[%109, %c0_79] : memref<64x512xf32, #tpu.memory_space<vmem>>, vector<8x512xf32>
    %c0_80 = arith.constant 0 : index
    %c0_81 = arith.constant 0 : index
    %111 = vector.load %arg4[%c0_80, %c0_81] : memref<128x512xf32, #tpu.memory_space<vmem>>, vector<128x512xf32>
    %cst_82 = arith.constant dense<0.000000e+00> : vector<8x512xf32>
    %112 = tpu.matmul %106, %111, %cst_82 {dimension_numbers = #tpu.dot_dimension_numbers<[1], [0], [0], [1], [0, 0, 1, 1], [], []>} : vector<8x128xf32>, vector<128x512xf32>, vector<8x512xf32> -> vector<8x512xf32>
    %113 = arith.addf %110, %112 : vector<8x512xf32>
    %114 = vector.extract_strided_slice %113 {offsets = [0, 0], sizes = [8, 128], strides = [1, 1]} : vector<8x512xf32> to vector<8x128xf32>
    %115 = arith.negf %114 : vector<8x128xf32>
    %116 = math.exp %115 : vector<8x128xf32>
    %cst_83 = arith.constant 1.000000e+00 : f32
    %117 = vector.broadcast %cst_83 : f32 to vector<8x128xf32>
    %118 = arith.addf %117, %116 : vector<8x128xf32>
    %119 = arith.divf %117, %118 : vector<8x128xf32>
    %120 = vector.extract_strided_slice %113 {offsets = [0, 128], sizes = [8, 128], strides = [1, 1]} : vector<8x512xf32> to vector<8x128xf32>
    %121 = arith.negf %120 : vector<8x128xf32>
    %122 = math.exp %121 : vector<8x128xf32>
    %cst_84 = arith.constant 1.000000e+00 : f32
    %123 = vector.broadcast %cst_84 : f32 to vector<8x128xf32>
    %124 = arith.addf %123, %122 : vector<8x128xf32>
    %125 = arith.divf %123, %124 : vector<8x128xf32>
    %126 = vector.extract_strided_slice %113 {offsets = [0, 256], sizes = [8, 128], strides = [1, 1]} : vector<8x512xf32> to vector<8x128xf32>
    %127 = math.tanh %126 : vector<8x128xf32>
    %128 = vector.extract_strided_slice %113 {offsets = [0, 384], sizes = [8, 128], strides = [1, 1]} : vector<8x512xf32> to vector<8x128xf32>
    %129 = arith.negf %128 : vector<8x128xf32>
    %130 = math.exp %129 : vector<8x128xf32>
    %cst_85 = arith.constant 1.000000e+00 : f32
    %131 = vector.broadcast %cst_85 : f32 to vector<8x128xf32>
    %132 = arith.addf %131, %130 : vector<8x128xf32>
    %133 = arith.divf %131, %132 : vector<8x128xf32>
    %134 = arith.mulf %125, %104 : vector<8x128xf32>
    %135 = arith.mulf %119, %127 : vector<8x128xf32>
    %136 = arith.addf %134, %135 : vector<8x128xf32>
    %137 = math.tanh %136 : vector<8x128xf32>
    %138 = arith.mulf %133, %137 : vector<8x128xf32>
    %c2_i32 = arith.constant 2 : i32
    %c8_i32_86 = arith.constant 8 : i32
    %139 = arith.muli %c2_i32, %c8_i32_86 : i32
    %140 = tpu.assume_multiple %139, 8 : i32
    %141 = arith.index_cast %140 : i32 to index
    %c0_87 = arith.constant 0 : index
    %142 = vector.load %arg10[%141, %c0_87] : memref<64x512xf32, #tpu.memory_space<vmem>>, vector<8x512xf32>
    %c0_88 = arith.constant 0 : index
    %c0_89 = arith.constant 0 : index
    %143 = vector.load %arg4[%c0_88, %c0_89] : memref<128x512xf32, #tpu.memory_space<vmem>>, vector<128x512xf32>
    %cst_90 = arith.constant dense<0.000000e+00> : vector<8x512xf32>
    %144 = tpu.matmul %138, %143, %cst_90 {dimension_numbers = #tpu.dot_dimension_numbers<[1], [0], [0], [1], [0, 0, 1, 1], [], []>} : vector<8x128xf32>, vector<128x512xf32>, vector<8x512xf32> -> vector<8x512xf32>
    %145 = arith.addf %142, %144 : vector<8x512xf32>
    %146 = vector.extract_strided_slice %145 {offsets = [0, 0], sizes = [8, 128], strides = [1, 1]} : vector<8x512xf32> to vector<8x128xf32>
    %147 = arith.negf %146 : vector<8x128xf32>
    %148 = math.exp %147 : vector<8x128xf32>
    %cst_91 = arith.constant 1.000000e+00 : f32
    %149 = vector.broadcast %cst_91 : f32 to vector<8x128xf32>
    %150 = arith.addf %149, %148 : vector<8x128xf32>
    %151 = arith.divf %149, %150 : vector<8x128xf32>
    %152 = vector.extract_strided_slice %145 {offsets = [0, 128], sizes = [8, 128], strides = [1, 1]} : vector<8x512xf32> to vector<8x128xf32>
    %153 = arith.negf %152 : vector<8x128xf32>
    %154 = math.exp %153 : vector<8x128xf32>
    %cst_92 = arith.constant 1.000000e+00 : f32
    %155 = vector.broadcast %cst_92 : f32 to vector<8x128xf32>
    %156 = arith.addf %155, %154 : vector<8x128xf32>
    %157 = arith.divf %155, %156 : vector<8x128xf32>
    %158 = vector.extract_strided_slice %145 {offsets = [0, 256], sizes = [8, 128], strides = [1, 1]} : vector<8x512xf32> to vector<8x128xf32>
    %159 = math.tanh %158 : vector<8x128xf32>
    %160 = vector.extract_strided_slice %145 {offsets = [0, 384], sizes = [8, 128], strides = [1, 1]} : vector<8x512xf32> to vector<8x128xf32>
    %161 = arith.negf %160 : vector<8x128xf32>
    %162 = math.exp %161 : vector<8x128xf32>
    %cst_93 = arith.constant 1.000000e+00 : f32
    %163 = vector.broadcast %cst_93 : f32 to vector<8x128xf32>
    %164 = arith.addf %163, %162 : vector<8x128xf32>
    %165 = arith.divf %163, %164 : vector<8x128xf32>
    %166 = arith.mulf %157, %136 : vector<8x128xf32>
    %167 = arith.mulf %151, %159 : vector<8x128xf32>
    %168 = arith.addf %166, %167 : vector<8x128xf32>
    %169 = math.tanh %168 : vector<8x128xf32>
    %170 = arith.mulf %165, %169 : vector<8x128xf32>
    %c3_i32 = arith.constant 3 : i32
    %c8_i32_94 = arith.constant 8 : i32
    %171 = arith.muli %c3_i32, %c8_i32_94 : i32
    %172 = tpu.assume_multiple %171, 8 : i32
    %173 = arith.index_cast %172 : i32 to index
    %c0_95 = arith.constant 0 : index
    %174 = vector.load %arg10[%173, %c0_95] : memref<64x512xf32, #tpu.memory_space<vmem>>, vector<8x512xf32>
    %c0_96 = arith.constant 0 : index
    %c0_97 = arith.constant 0 : index
    %175 = vector.load %arg4[%c0_96, %c0_97] : memref<128x512xf32, #tpu.memory_space<vmem>>, vector<128x512xf32>
    %cst_98 = arith.constant dense<0.000000e+00> : vector<8x512xf32>
    %176 = tpu.matmul %170, %175, %cst_98 {dimension_numbers = #tpu.dot_dimension_numbers<[1], [0], [0], [1], [0, 0, 1, 1], [], []>} : vector<8x128xf32>, vector<128x512xf32>, vector<8x512xf32> -> vector<8x512xf32>
    %177 = arith.addf %174, %176 : vector<8x512xf32>
    %178 = vector.extract_strided_slice %177 {offsets = [0, 0], sizes = [8, 128], strides = [1, 1]} : vector<8x512xf32> to vector<8x128xf32>
    %179 = arith.negf %178 : vector<8x128xf32>
    %180 = math.exp %179 : vector<8x128xf32>
    %cst_99 = arith.constant 1.000000e+00 : f32
    %181 = vector.broadcast %cst_99 : f32 to vector<8x128xf32>
    %182 = arith.addf %181, %180 : vector<8x128xf32>
    %183 = arith.divf %181, %182 : vector<8x128xf32>
    %184 = vector.extract_strided_slice %177 {offsets = [0, 128], sizes = [8, 128], strides = [1, 1]} : vector<8x512xf32> to vector<8x128xf32>
    %185 = arith.negf %184 : vector<8x128xf32>
    %186 = math.exp %185 : vector<8x128xf32>
    %cst_100 = arith.constant 1.000000e+00 : f32
    %187 = vector.broadcast %cst_100 : f32 to vector<8x128xf32>
    %188 = arith.addf %187, %186 : vector<8x128xf32>
    %189 = arith.divf %187, %188 : vector<8x128xf32>
    %190 = vector.extract_strided_slice %177 {offsets = [0, 256], sizes = [8, 128], strides = [1, 1]} : vector<8x512xf32> to vector<8x128xf32>
    %191 = math.tanh %190 : vector<8x128xf32>
    %192 = vector.extract_strided_slice %177 {offsets = [0, 384], sizes = [8, 128], strides = [1, 1]} : vector<8x512xf32> to vector<8x128xf32>
    %193 = arith.negf %192 : vector<8x128xf32>
    %194 = math.exp %193 : vector<8x128xf32>
    %cst_101 = arith.constant 1.000000e+00 : f32
    %195 = vector.broadcast %cst_101 : f32 to vector<8x128xf32>
    %196 = arith.addf %195, %194 : vector<8x128xf32>
    %197 = arith.divf %195, %196 : vector<8x128xf32>
    %198 = arith.mulf %189, %168 : vector<8x128xf32>
    %199 = arith.mulf %183, %191 : vector<8x128xf32>
    %200 = arith.addf %198, %199 : vector<8x128xf32>
    %201 = math.tanh %200 : vector<8x128xf32>
    %202 = arith.mulf %197, %201 : vector<8x128xf32>
    %c4_i32 = arith.constant 4 : i32
    %c8_i32_102 = arith.constant 8 : i32
    %203 = arith.muli %c4_i32, %c8_i32_102 : i32
    %204 = tpu.assume_multiple %203, 8 : i32
    %205 = arith.index_cast %204 : i32 to index
    %c0_103 = arith.constant 0 : index
    %206 = vector.load %arg10[%205, %c0_103] : memref<64x512xf32, #tpu.memory_space<vmem>>, vector<8x512xf32>
    %c0_104 = arith.constant 0 : index
    %c0_105 = arith.constant 0 : index
    %207 = vector.load %arg4[%c0_104, %c0_105] : memref<128x512xf32, #tpu.memory_space<vmem>>, vector<128x512xf32>
    %cst_106 = arith.constant dense<0.000000e+00> : vector<8x512xf32>
    %208 = tpu.matmul %202, %207, %cst_106 {dimension_numbers = #tpu.dot_dimension_numbers<[1], [0], [0], [1], [0, 0, 1, 1], [], []>} : vector<8x128xf32>, vector<128x512xf32>, vector<8x512xf32> -> vector<8x512xf32>
    %209 = arith.addf %206, %208 : vector<8x512xf32>
    %210 = vector.extract_strided_slice %209 {offsets = [0, 0], sizes = [8, 128], strides = [1, 1]} : vector<8x512xf32> to vector<8x128xf32>
    %211 = arith.negf %210 : vector<8x128xf32>
    %212 = math.exp %211 : vector<8x128xf32>
    %cst_107 = arith.constant 1.000000e+00 : f32
    %213 = vector.broadcast %cst_107 : f32 to vector<8x128xf32>
    %214 = arith.addf %213, %212 : vector<8x128xf32>
    %215 = arith.divf %213, %214 : vector<8x128xf32>
    %216 = vector.extract_strided_slice %209 {offsets = [0, 128], sizes = [8, 128], strides = [1, 1]} : vector<8x512xf32> to vector<8x128xf32>
    %217 = arith.negf %216 : vector<8x128xf32>
    %218 = math.exp %217 : vector<8x128xf32>
    %cst_108 = arith.constant 1.000000e+00 : f32
    %219 = vector.broadcast %cst_108 : f32 to vector<8x128xf32>
    %220 = arith.addf %219, %218 : vector<8x128xf32>
    %221 = arith.divf %219, %220 : vector<8x128xf32>
    %222 = vector.extract_strided_slice %209 {offsets = [0, 256], sizes = [8, 128], strides = [1, 1]} : vector<8x512xf32> to vector<8x128xf32>
    %223 = math.tanh %222 : vector<8x128xf32>
    %224 = vector.extract_strided_slice %209 {offsets = [0, 384], sizes = [8, 128], strides = [1, 1]} : vector<8x512xf32> to vector<8x128xf32>
    %225 = arith.negf %224 : vector<8x128xf32>
    %226 = math.exp %225 : vector<8x128xf32>
    %cst_109 = arith.constant 1.000000e+00 : f32
    %227 = vector.broadcast %cst_109 : f32 to vector<8x128xf32>
    %228 = arith.addf %227, %226 : vector<8x128xf32>
    %229 = arith.divf %227, %228 : vector<8x128xf32>
    %230 = arith.mulf %221, %200 : vector<8x128xf32>
    %231 = arith.mulf %215, %223 : vector<8x128xf32>
    %232 = arith.addf %230, %231 : vector<8x128xf32>
    %233 = math.tanh %232 : vector<8x128xf32>
    %234 = arith.mulf %229, %233 : vector<8x128xf32>
    %c5_i32 = arith.constant 5 : i32
    %c8_i32_110 = arith.constant 8 : i32
    %235 = arith.muli %c5_i32, %c8_i32_110 : i32
    %236 = tpu.assume_multiple %235, 8 : i32
    %237 = arith.index_cast %236 : i32 to index
    %c0_111 = arith.constant 0 : index
    %238 = vector.load %arg10[%237, %c0_111] : memref<64x512xf32, #tpu.memory_space<vmem>>, vector<8x512xf32>
    %c0_112 = arith.constant 0 : index
    %c0_113 = arith.constant 0 : index
    %239 = vector.load %arg4[%c0_112, %c0_113] : memref<128x512xf32, #tpu.memory_space<vmem>>, vector<128x512xf32>
    %cst_114 = arith.constant dense<0.000000e+00> : vector<8x512xf32>
    %240 = tpu.matmul %234, %239, %cst_114 {dimension_numbers = #tpu.dot_dimension_numbers<[1], [0], [0], [1], [0, 0, 1, 1], [], []>} : vector<8x128xf32>, vector<128x512xf32>, vector<8x512xf32> -> vector<8x512xf32>
    %241 = arith.addf %238, %240 : vector<8x512xf32>
    %242 = vector.extract_strided_slice %241 {offsets = [0, 0], sizes = [8, 128], strides = [1, 1]} : vector<8x512xf32> to vector<8x128xf32>
    %243 = arith.negf %242 : vector<8x128xf32>
    %244 = math.exp %243 : vector<8x128xf32>
    %cst_115 = arith.constant 1.000000e+00 : f32
    %245 = vector.broadcast %cst_115 : f32 to vector<8x128xf32>
    %246 = arith.addf %245, %244 : vector<8x128xf32>
    %247 = arith.divf %245, %246 : vector<8x128xf32>
    %248 = vector.extract_strided_slice %241 {offsets = [0, 128], sizes = [8, 128], strides = [1, 1]} : vector<8x512xf32> to vector<8x128xf32>
    %249 = arith.negf %248 : vector<8x128xf32>
    %250 = math.exp %249 : vector<8x128xf32>
    %cst_116 = arith.constant 1.000000e+00 : f32
    %251 = vector.broadcast %cst_116 : f32 to vector<8x128xf32>
    %252 = arith.addf %251, %250 : vector<8x128xf32>
    %253 = arith.divf %251, %252 : vector<8x128xf32>
    %254 = vector.extract_strided_slice %241 {offsets = [0, 256], sizes = [8, 128], strides = [1, 1]} : vector<8x512xf32> to vector<8x128xf32>
    %255 = math.tanh %254 : vector<8x128xf32>
    %256 = vector.extract_strided_slice %241 {offsets = [0, 384], sizes = [8, 128], strides = [1, 1]} : vector<8x512xf32> to vector<8x128xf32>
    %257 = arith.negf %256 : vector<8x128xf32>
    %258 = math.exp %257 : vector<8x128xf32>
    %cst_117 = arith.constant 1.000000e+00 : f32
    %259 = vector.broadcast %cst_117 : f32 to vector<8x128xf32>
    %260 = arith.addf %259, %258 : vector<8x128xf32>
    %261 = arith.divf %259, %260 : vector<8x128xf32>
    %262 = arith.mulf %253, %232 : vector<8x128xf32>
    %263 = arith.mulf %247, %255 : vector<8x128xf32>
    %264 = arith.addf %262, %263 : vector<8x128xf32>
    %265 = math.tanh %264 : vector<8x128xf32>
    %266 = arith.mulf %261, %265 : vector<8x128xf32>
    %c6_i32 = arith.constant 6 : i32
    %c8_i32_118 = arith.constant 8 : i32
    %267 = arith.muli %c6_i32, %c8_i32_118 : i32
    %268 = tpu.assume_multiple %267, 8 : i32
    %269 = arith.index_cast %268 : i32 to index
    %c0_119 = arith.constant 0 : index
    %270 = vector.load %arg10[%269, %c0_119] : memref<64x512xf32, #tpu.memory_space<vmem>>, vector<8x512xf32>
    %c0_120 = arith.constant 0 : index
    %c0_121 = arith.constant 0 : index
    %271 = vector.load %arg4[%c0_120, %c0_121] : memref<128x512xf32, #tpu.memory_space<vmem>>, vector<128x512xf32>
    %cst_122 = arith.constant dense<0.000000e+00> : vector<8x512xf32>
    %272 = tpu.matmul %266, %271, %cst_122 {dimension_numbers = #tpu.dot_dimension_numbers<[1], [0], [0], [1], [0, 0, 1, 1], [], []>} : vector<8x128xf32>, vector<128x512xf32>, vector<8x512xf32> -> vector<8x512xf32>
    %273 = arith.addf %270, %272 : vector<8x512xf32>
    %274 = vector.extract_strided_slice %273 {offsets = [0, 0], sizes = [8, 128], strides = [1, 1]} : vector<8x512xf32> to vector<8x128xf32>
    %275 = arith.negf %274 : vector<8x128xf32>
    %276 = math.exp %275 : vector<8x128xf32>
    %cst_123 = arith.constant 1.000000e+00 : f32
    %277 = vector.broadcast %cst_123 : f32 to vector<8x128xf32>
    %278 = arith.addf %277, %276 : vector<8x128xf32>
    %279 = arith.divf %277, %278 : vector<8x128xf32>
    %280 = vector.extract_strided_slice %273 {offsets = [0, 128], sizes = [8, 128], strides = [1, 1]} : vector<8x512xf32> to vector<8x128xf32>
    %281 = arith.negf %280 : vector<8x128xf32>
    %282 = math.exp %281 : vector<8x128xf32>
    %cst_124 = arith.constant 1.000000e+00 : f32
    %283 = vector.broadcast %cst_124 : f32 to vector<8x128xf32>
    %284 = arith.addf %283, %282 : vector<8x128xf32>
    %285 = arith.divf %283, %284 : vector<8x128xf32>
    %286 = vector.extract_strided_slice %273 {offsets = [0, 256], sizes = [8, 128], strides = [1, 1]} : vector<8x512xf32> to vector<8x128xf32>
    %287 = math.tanh %286 : vector<8x128xf32>
    %288 = vector.extract_strided_slice %273 {offsets = [0, 384], sizes = [8, 128], strides = [1, 1]} : vector<8x512xf32> to vector<8x128xf32>
    %289 = arith.negf %288 : vector<8x128xf32>
    %290 = math.exp %289 : vector<8x128xf32>
    %cst_125 = arith.constant 1.000000e+00 : f32
    %291 = vector.broadcast %cst_125 : f32 to vector<8x128xf32>
    %292 = arith.addf %291, %290 : vector<8x128xf32>
    %293 = arith.divf %291, %292 : vector<8x128xf32>
    %294 = arith.mulf %285, %264 : vector<8x128xf32>
    %295 = arith.mulf %279, %287 : vector<8x128xf32>
    %296 = arith.addf %294, %295 : vector<8x128xf32>
    %297 = math.tanh %296 : vector<8x128xf32>
    %298 = arith.mulf %293, %297 : vector<8x128xf32>
    %c7_i32 = arith.constant 7 : i32
    %c8_i32_126 = arith.constant 8 : i32
    %299 = arith.muli %c7_i32, %c8_i32_126 : i32
    %300 = tpu.assume_multiple %299, 8 : i32
    %301 = arith.index_cast %300 : i32 to index
    %c0_127 = arith.constant 0 : index
    %302 = vector.load %arg10[%301, %c0_127] : memref<64x512xf32, #tpu.memory_space<vmem>>, vector<8x512xf32>
    %c0_128 = arith.constant 0 : index
    %c0_129 = arith.constant 0 : index
    %303 = vector.load %arg4[%c0_128, %c0_129] : memref<128x512xf32, #tpu.memory_space<vmem>>, vector<128x512xf32>
    %cst_130 = arith.constant dense<0.000000e+00> : vector<8x512xf32>
    %304 = tpu.matmul %298, %303, %cst_130 {dimension_numbers = #tpu.dot_dimension_numbers<[1], [0], [0], [1], [0, 0, 1, 1], [], []>} : vector<8x128xf32>, vector<128x512xf32>, vector<8x512xf32> -> vector<8x512xf32>
    %305 = arith.addf %302, %304 : vector<8x512xf32>
    %306 = vector.extract_strided_slice %305 {offsets = [0, 0], sizes = [8, 128], strides = [1, 1]} : vector<8x512xf32> to vector<8x128xf32>
    %307 = arith.negf %306 : vector<8x128xf32>
    %308 = math.exp %307 : vector<8x128xf32>
    %cst_131 = arith.constant 1.000000e+00 : f32
    %309 = vector.broadcast %cst_131 : f32 to vector<8x128xf32>
    %310 = arith.addf %309, %308 : vector<8x128xf32>
    %311 = arith.divf %309, %310 : vector<8x128xf32>
    %312 = vector.extract_strided_slice %305 {offsets = [0, 128], sizes = [8, 128], strides = [1, 1]} : vector<8x512xf32> to vector<8x128xf32>
    %313 = arith.negf %312 : vector<8x128xf32>
    %314 = math.exp %313 : vector<8x128xf32>
    %cst_132 = arith.constant 1.000000e+00 : f32
    %315 = vector.broadcast %cst_132 : f32 to vector<8x128xf32>
    %316 = arith.addf %315, %314 : vector<8x128xf32>
    %317 = arith.divf %315, %316 : vector<8x128xf32>
    %318 = vector.extract_strided_slice %305 {offsets = [0, 256], sizes = [8, 128], strides = [1, 1]} : vector<8x512xf32> to vector<8x128xf32>
    %319 = math.tanh %318 : vector<8x128xf32>
    %320 = vector.extract_strided_slice %305 {offsets = [0, 384], sizes = [8, 128], strides = [1, 1]} : vector<8x512xf32> to vector<8x128xf32>
    %321 = arith.negf %320 : vector<8x128xf32>
    %322 = math.exp %321 : vector<8x128xf32>
    %cst_133 = arith.constant 1.000000e+00 : f32
    %323 = vector.broadcast %cst_133 : f32 to vector<8x128xf32>
    %324 = arith.addf %323, %322 : vector<8x128xf32>
    %325 = arith.divf %323, %324 : vector<8x128xf32>
    %326 = arith.mulf %317, %296 : vector<8x128xf32>
    %327 = arith.mulf %311, %319 : vector<8x128xf32>
    %328 = arith.addf %326, %327 : vector<8x128xf32>
    %329 = math.tanh %328 : vector<8x128xf32>
    %330 = arith.mulf %325, %329 : vector<8x128xf32>
    %c8_i32_134 = arith.constant 8 : i32
    %c0_135 = arith.constant 0 : index
    %c0_136 = arith.constant 0 : index
    %331 = vector.load %arg6[%c0_135, %c0_136] : memref<128x256xf32, #tpu.memory_space<vmem>>, vector<128x256xf32>
    %cst_137 = arith.constant dense<0.000000e+00> : vector<8x256xf32>
    %332 = tpu.matmul %330, %331, %cst_137 {dimension_numbers = #tpu.dot_dimension_numbers<[1], [0], [0], [1], [0, 0, 1, 1], [], []>} : vector<8x128xf32>, vector<128x256xf32>, vector<8x256xf32> -> vector<8x256xf32>
    %c0_138 = arith.constant 0 : index
    %c0_139 = arith.constant 0 : index
    %333 = vector.load %arg7[%c0_138, %c0_139] : memref<1x256xf32, #tpu.memory_space<vmem>>, vector<1x256xf32>
    %334 = vector.broadcast %333 : vector<1x256xf32> to vector<8x256xf32>
    %335 = arith.addf %332, %334 : vector<8x256xf32>
    %c0_140 = arith.constant 0 : index
    %c0_141 = arith.constant 0 : index
    %336 = vector.load %arg8[%c0_140, %c0_141] : memref<8x256xf32, #tpu.memory_space<vmem>>, vector<8x256xf32>
    tpu.vector_store %arg8[%c0_140, %c0_141], %335 {strides = array<i32>} : memref<8x256xf32, #tpu.memory_space<vmem>>, vector<8x256xf32>,
    return
  }
  func.func @transform_0(%arg0: i32, %arg1: memref<2x8xi32, #tpu.memory_space<smem>>) -> (i32, i32) {
    %c0_i32 = arith.constant 0 : i32
    %c0_i32_0 = arith.constant 0 : i32
    %c0_i32_1 = arith.constant 0 : i32
    return %c0_i32, %c0_i32_0 : i32, i32
  }
  func.func @transform_1(%arg0: i32, %arg1: memref<2x8xi32, #tpu.memory_space<smem>>) -> (i32, i32) {
    %c0_i32 = arith.constant 0 : i32
    %c0_i32_0 = arith.constant 0 : i32
    %c0_i32_1 = arith.constant 0 : i32
    return %c0_i32, %c0_i32_0 : i32, i32
  }
  func.func @transform_2(%arg0: i32, %arg1: memref<2x8xi32, #tpu.memory_space<smem>>) -> (i32, i32) {
    %c0_i32 = arith.constant 0 : i32
    %c0_i32_0 = arith.constant 0 : i32
    %c0_i32_1 = arith.constant 0 : i32
    return %c0_i32, %c0_i32_0 : i32, i32
  }
  func.func @transform_3(%arg0: i32, %arg1: memref<2x8xi32, #tpu.memory_space<smem>>) -> (i32, i32) {
    %c0_i32 = arith.constant 0 : i32
    %c0_i32_0 = arith.constant 0 : i32
    %c0_i32_1 = arith.constant 0 : i32
    return %c0_i32, %c0_i32_0 : i32, i32
  }
  func.func @transform_4(%arg0: i32, %arg1: memref<2x8xi32, #tpu.memory_space<smem>>) -> (i32, i32) {
    %c0_i32 = arith.constant 0 : i32
    %c0_i32_0 = arith.constant 0 : i32
    %c0_i32_1 = arith.constant 0 : i32
    return %c0_i32, %c0_i32_0 : i32, i32
  }
  func.func @transform_5(%arg0: i32, %arg1: memref<2x8xi32, #tpu.memory_space<smem>>) -> (i32, i32) {
    %c0_i32 = arith.constant 0 : i32
    %c0_i32_0 = arith.constant 0 : i32
    %c0_i32_1 = arith.constant 0 : i32
    return %c0_i32, %c0_i32_0 : i32, i32
  }
  func.func @transform_6(%arg0: i32, %arg1: memref<2x8xi32, #tpu.memory_space<smem>>) -> (i32, i32) {
    %c0_i32 = arith.constant 0 : i32
    %c0_i32_0 = arith.constant 0 : i32
    %c0_i32_1 = arith.constant 0 : i32
    return %c0_i32, %c0_i32_0 : i32, i32
  }
}

</mosaic_0001>

<bundles_post_ra>
// kernel: tpu_custom_call.1
= control target key start
LH: loop header
LB: loop body
LE: loop exit
PB: predicated region body
PF: predicated region fallthrough
CT: control target
= control target key end

     0   :  { %s3764_s0 = inlined_call_operand.hbm [shape: s32[2,8], index: 0, kind: input, shape index: {}]   ;;  %s3765_s1 = inlined_call_operand.hbm [shape: f32[256,128], index: 1, kind: input, shape index: {}]   ;;  %s3766_s2 = inlined_call_operand.hbm [shape: f32[128,512], index: 2, kind: input, shape index: {}]   ;;  %s3767_s3 = inlined_call_operand.hbm [shape: f32[128,512], index: 3, kind: input, shape index: {}]   ;;  %s3768_s4 = inlined_call_operand.vmem [shape: f32[1,512], index: 4, kind: input, shape index: {}]   ;;  %s3769_s5 = inlined_call_operand.hbm [shape: f32[128,256], index: 5, kind: input, shape index: {}]   ;;  %s3770_s6 = inlined_call_operand.vmem [shape: f32[1,256], index: 6, kind: input, shape index: {}]   ;;  %s3771_s7 = inlined_call_operand.hbm [shape: f32[8,256], index: 7, kind: output, shape index: {}]  }
   0x1   :  { %s2997_s26 = scalar_lea.hbm %s3764_s0, 32 }
   0x2   :  { %p2998_p0 = scmp.ne.s32.totalorder %s3764_s0, %s2997_s26  ;;  %p3001_p1 = scmp.lt.u32.totalorder %s2997_s26, %s3764_s0 }
   0x4   :  { %p3003_p2 = pnand %p3001_p1, %p2998_p0 }
   0x6   :  { %3006 = shalt.err (!%p3003_p2)  }
   0x7   :  { %s3127_s8 = smov [#allocation5]  }
   0x8   :  { %13 = dma.hbm_to_smem %s3764_s0, 32, %s3127_s8, [#allocation4] }
   0x9   :  { %3117 = dma.done.wait [#allocation4], 32 }
   0xa   :  { %3118 = vsyncadd [#allocation4], 4294967264 }
   0xb   :  { %15 = sfence }
   0xc   :  { %16 = vsyncpa [#allocation7], 0 }
   0xd   :  { %17 = vsyncpa [#allocation10], 0 }
   0xe   :  { %18 = vsyncpa [#allocation13], 0 }
   0xf   :  { %19 = vsyncpa [#allocation8], 0  ;;  %s3128_s11 = smov [#allocation9]   ;;  %s3007_s15 = scalar_lea.hbm %s3766_s2, 8192 }
  0x10   :  { %s37_s12 = sshll.u32 %s3128_s11, 4  ;;  %p3008_p3 = scmp.ne.s32.totalorder %s3766_s2, %s3007_s15  ;;  %s38_s12 = int_to_ptr.vmem [resolvable:$true] %s37_s12 }
  0x11   :  { %p3011_p4 = scmp.lt.u32.totalorder %s3007_s15, %s3766_s2 }
  0x13   :  { %p3013_p5 = pnand %p3011_p4, %p3008_p3 }
  0x15   :  { %3016 = shalt.err (!%p3013_p5)
}
  0x16   :  { %s3017_s19 = scalar_lea.vmem %s38_s12, 8192  ;;  %p3022_p7 = scmp.lt.s32.totalorder %s38_s12, %s38_s12 }
  0x17   :  { %p3018_p6 = scmp.ne.s32.totalorder %s38_s12, %s3017_s19  ;;  %p3023_p8 = scmp.lt.s32.totalorder %s3017_s19, %s3017_s19 }
  0x19   :  { %p3024_p9 = por %p3023_p8, %p3022_p7 }
  0x1b   :  { %p3025_p10 = pnand %p3024_p9, %p3018_p6 }
  0x1d   :  { %3028 = shalt.err (!%p3025_p10)
}
  0x1e   :  { %s3129_s20 = smov 512   ;;  %s3130_s21 = smov 32  }
  0x1f   :  { %43 = dma.hbm_to_vmem [thread:$0]  %s3766_s2, 8192, %s38_s12, [#allocation10], %s3129_s20, %s3129_s20, %s3130_s21  }
  0x20   :  { %s3131_s24 = smov [#allocation6]   ;;  %s3029_s28 = scalar_lea.hbm %s3765_s1, 4096 }
  0x21   :  { %s25_s25 = sshll.u32 %s3131_s24, 4  ;;  %p3030_p11 = scmp.ne.s32.totalorder %s3765_s1, %s3029_s28  ;;  %s26_s25 = int_to_ptr.vmem [resolvable:$true] %s25_s25 }
  0x22   :  { %p3033_p12 = scmp.lt.u32.totalorder %s3029_s28, %s3765_s1 }
  0x24   :  { %p3035_p13 = pnand %p3033_p12, %p3030_p11 }
  0x26   :  { %3038 = shalt.err (!%p3035_p13)
}
  0x27   :  { %s3039_s10 = scalar_lea.vmem %s26_s25, 4096  ;;  %p3044_p1 = scmp.lt.s32.totalorder %s26_s25, %s26_s25 }
  0x28   :  { %p3040_p0 = scmp.ne.s32.totalorder %s26_s25, %s3039_s10  ;;  %p3045_p2 = scmp.lt.s32.totalorder %s3039_s10, %s3039_s10 }
  0x2a   :  { %p3046_p3 = por %p3045_p2, %p3044_p1 }
  0x2c   :  { %p3047_p4 = pnand %p3046_p3, %p3040_p0 }
  0x2e   :  { %3050 = shalt.err (!%p3047_p4)
}
  0x2f   :  { %s3132_s2 = smov 128   ;;  %s3133_s11 = smov 8  }
  0x30   :  { %31 = dma.hbm_to_vmem [thread:$0]  %s3765_s1, 4096, %s26_s25, [#allocation7], %s3132_s2, %s3132_s2, %s3133_s11  }
  0x31   :  { %s3134_s14 = smov [#allocation11]   ;;  %s3135_s16 = smov [#allocation12]  }
  0x32   :  { %s49_s15 = sshll.u32 %s3134_s14, 4  ;;  %s63_s17 = sshll.u32 %s3135_s16, 4  ;;  %s50_s15 = int_to_ptr.vmem [resolvable:$true] %s49_s15  ;;  %s3219_s17 = int_to_ptr.vmem [resolvable:$true] %s63_s17 }
  0x33   :  { %s3051_s19 = scalar_lea.hbm %s3767_s3, 8192 }
  0x34   :  { %p3052_p5 = scmp.ne.s32.totalorder %s3767_s3, %s3051_s19  ;;  %p3055_p6 = scmp.lt.u32.totalorder %s3051_s19, %s3767_s3 }
  0x36   :  { %p3057_p7 = pnand %p3055_p6, %p3052_p5 }
  0x38   :  { %3060 = shalt.err (!%p3057_p7)
}
  0x39   :  { %s3061_s1 = scalar_lea.vmem %s50_s15, 8192  ;;  %p3066_p9 = scmp.lt.s32.totalorder %s50_s15, %s50_s15 }
  0x3a   :  { %p3062_p8 = scmp.ne.s32.totalorder %s50_s15, %s3061_s1  ;;  %p3067_p10 = scmp.lt.s32.totalorder %s3061_s1, %s3061_s1 }
  0x3c   :  { %p3068_p11 = por %p3067_p10, %p3066_p9 }
  0x3e   :  { %p3069_p12 = pnand %p3068_p11, %p3062_p8 }
  0x40   :  { %3072 = shalt.err (!%p3069_p12)
}
  0x41   :  { %55 = dma.hbm_to_vmem [thread:$0]  %s3767_s3, 8192, %s50_s15, [#allocation10], %s3129_s20, %s3129_s20, %s3130_s21  }
  0x42   :  { %s3073_s30 = scalar_lea.hbm %s3769_s5, 4096 }
  0x43   :  { %p3074_p13 = scmp.ne.s32.totalorder %s3769_s5, %s3073_s30  ;;  %p3077_p0 = scmp.lt.u32.totalorder %s3073_s30, %s3769_s5 }
  0x45   :  { %p3079_p1 = pnand %p3077_p0, %p3074_p13 }
  0x47   :  { %3082 = shalt.err (!%p3079_p1)
}
  0x48   :  { %s3083_s11 = scalar_lea.vmem %s3219_s17, 4096  ;;  %p3088_p3 = scmp.lt.s32.totalorder %s3219_s17, %s3219_s17 }
  0x49   :  { %p3084_p2 = scmp.ne.s32.totalorder %s3219_s17, %s3083_s11  ;;  %p3089_p4 = scmp.lt.s32.totalorder %s3083_s11, %s3083_s11 }
  0x4b   :  { %p3090_p5 = por %p3089_p4, %p3088_p3 }
  0x4d   :  { %p3091_p6 = pnand %p3090_p5, %p3084_p2 }
  0x4f   :  { %3094 = shalt.err (!%p3091_p6)
}
  0x50   :  { %s3136_s3 = smov 256   ;;  %s3137_s20 = smov 16  }
  0x51   :  { %69 = dma.hbm_to_vmem [thread:$0]  %s3769_s5, 4096, %s3219_s17, [#allocation13], %s3136_s3, %s3136_s3, %s3137_s20  }
  0x52   :  { %3119 = dma.done.wait [#allocation7], 4096  }
  0x53   :  { %3120 = vsyncadd [#allocation7], 4294963200 }
  0x54   :  { %3121 = dma.done.wait [#allocation10], 16384  }
  0x55   :  { %3122 = vsyncadd [#allocation10], 4294950912 }
  0x56   :  { %3123 = dma.done.wait [#allocation13], 4096  }
  0x57   :  { %3124 = vsyncadd [#allocation13], 4294963200  ;;  %v3138_v0 = vmov 0.0   ;;  %v165_v1 = vld [vmem:[#allocation9 + $0x8] sm:$0xff]  ;;  %v167_v3 = vld [vmem:[#allocation9 + $0x18] sm:$0xff]  ;;  %s3263_s5 = sld [smem:[#allocation5]] }
  0x58   :  { %314 = vmatprep.mubr.f32.mxu0 %v3138_v0  ;;  %84 = vst [vmem:[#allocation2] sm:$0xff] %v3138_v0  ;;  %85 = vst [vmem:[#allocation2 + $0x8] sm:$0xff] %v3138_v0  ;;  %427 = vmatprep.mubr.f32.mxu1 %v3138_v0  ;;  %v169_v2 = vld [vmem:[#allocation9 + $0x28] sm:$0xff]  ;;  %v171_v5 = vld [vmem:[#allocation9 + $0x38] sm:$0xff]  ;;  %s3265_s13 = sld [smem:[#allocation5 + $0x80]]  ;;  %s3267_s14 = sld [smem:[#allocation5 + $0x1]] }
  0x59   :  { %86 = vst [vmem:[#allocation2 + $0x10] sm:$0xff] %v3138_v0  ;;  %87 = vst [vmem:[#allocation2 + $0x18] sm:$0xff] %v3138_v0  ;;  %v2184_v4 = vpack.c.bf16 %v169_v2, %v165_v1  ;;  %v164_v6 = vld [vmem:[#allocation9] sm:$0xff]  ;;  %v2216_v8 = vpack.c.bf16 %v171_v5, %v167_v3  ;;  %v166_v10 = vld [vmem:[#allocation9 + $0x10] sm:$0xff]  ;;  %s3269_s15 = sld [smem:[#allocation5 + $0x81]]  ;;  %s3271_s16 = sld [smem:[#allocation5 + $0x2]] }
  0x5a   :  { %88 = vst [vmem:[#allocation2 + $0x20] sm:$0xff] %v3138_v0  ;;  %89 = vst [vmem:[#allocation2 + $0x28] sm:$0xff] %v3138_v0  ;;  %v168_v7 = vld [vmem:[#allocation9 + $0x20] sm:$0xff]  ;;  %v170_v11 = vld [vmem:[#allocation9 + $0x30] sm:$0xff]  ;;  %s3273_s17 = sld [smem:[#allocation5 + $0x82]]  ;;  %s3275_s18 = sld [smem:[#allocation5 + $0x3]] }
  0x5b   :  { %90 = vst [vmem:[#allocation2 + $0x30] sm:$0xff] %v3138_v0  ;;  %91 = vst [vmem:[#allocation2 + $0x38] sm:$0xff] %v3138_v0  ;;  %v2186_v9 = vpack.c.bf16 %v168_v7, %v164_v6  ;;  %v173_v12 = vld [vmem:[#allocation9 + $0x48] sm:$0xff]  ;;  %2185 = vmatprep.subr.bf16.mxu0 %v2184_v4  ;;  %v2218_v13 = vpack.c.bf16 %v170_v11, %v166_v10  ;;  %v175_v15 = vld [vmem:[#allocation9 + $0x58] sm:$0xff]  ;;  %2217 = vmatprep.subr.bf16.mxu1 %v2216_v8  ;;  %s3277_s0 = sld [smem:[#allocation5 + $0x83]]  ;;  %s3279_s19 = sld [smem:[#allocation5 + $0x4]] }
  0x5c   :  { %v177_v14 = vld [vmem:[#allocation9 + $0x68] sm:$0xff]  ;;  %v179_v16 = vld [vmem:[#allocation9 + $0x78] sm:$0xff]  ;;  %v172_v19 = vld [vmem:[#allocation9 + $0x40] sm:$0xff]  ;;  %s3283_s24 = sld [smem:[#allocation5 + $0x84]]  ;;  %s3287_s25 = sld [smem:[#allocation5 + $0x5]] }
  0x5d   :  { %2187 = vmatpush1.bf16.msra.mxu0 %v2186_v9  ;;  %v2188_v17 = vpack.c.bf16 %v177_v14, %v173_v12  ;;  %v2220_v18 = vpack.c.bf16 %v179_v16, %v175_v15  ;;  %v176_v20 = vld [vmem:[#allocation9 + $0x60] sm:$0xff]  ;;  %v174_v21 = vld [vmem:[#allocation9 + $0x50] sm:$0xff]  ;;  %2219 = vmatpush1.bf16.msra.mxu1 %v2218_v13  ;;  %v181_v24 = vld [vmem:[#allocation9 + $0x88] sm:$0xff]  ;;  %s93_s22 = scalar_lea.vmem [#allocation6], %s3263_s5  ;;  %s3289_s27 = sld [smem:[#allocation5 + $0x85]] }
  0x5e   :  { %v2190_v22 = vpack.c.bf16 %v176_v20, %v172_v19  ;;  %v178_v23 = vld [vmem:[#allocation9 + $0x70] sm:$0xff]  ;;  %v185_v25 = vld [vmem:[#allocation9 + $0xa8] sm:$0xff]  ;;  %v183_v28 = vld [vmem:[#allocation9 + $0x98] sm:$0xff]  ;;  %s97_s23 = scalar_lea.vmem [#allocation6], %s3265_s13  ;;  %s101_s26 = scalar_lea.vmem [#allocation6], %s3267_s14 }
  0x5f   :  { %2189 = vmatprep.subr.bf16.mxu0 %v2188_v17  ;;  %2221 = vmatprep.subr.bf16.mxu1 %v2220_v18  ;;  %v2222_v26 = vpack.c.bf16 %v178_v23, %v174_v21  ;;  %v2192_v27 = vpack.c.bf16 %v185_v25, %v181_v24  ;;  %v187_v29 = vld [vmem:[#allocation9 + $0xb8] sm:$0xff]  ;;  %v180_v30 = vld [vmem:[#allocation9 + $0x80] sm:$0xff]  ;;  %v182_v33 = vld [vmem:[#allocation9 + $0x90] sm:$0xff]  ;;  %s105_s1 = scalar_lea.vmem [#allocation6], %s3269_s15  ;;  %s109_s28 = scalar_lea.vmem [#allocation6], %s3271_s16 }
  0x60   :  { %v2224_v31 = vpack.c.bf16 %v187_v29, %v183_v28  ;;  %v184_v32 = vld [vmem:[#allocation9 + $0xa0] sm:$0xff]  ;;  %v186_v34 = vld [vmem:[#allocation9 + $0xb0] sm:$0xff]  ;;  %v189_v36 = vld [vmem:[#allocation9 + $0xc8] sm:$0xff]  ;;  %s113_s29 = scalar_lea.vmem [#allocation6], %s3273_s17  ;;  %s117_s30 = scalar_lea.vmem [#allocation6], %s3275_s18 }
  0x61   :  { %2191 = vmatpush1.bf16.msra.mxu0 %v2190_v22  ;;  %v2194_v35 = vpack.c.bf16 %v184_v32, %v180_v30  ;;  %v193_v37 = vld [vmem:[#allocation9 + $0xe8] sm:$0xff]  ;;  %v191_v38 = vld [vmem:[#allocation9 + $0xd8] sm:$0xff]  ;;  %2223 = vmatpush1.bf16.msra.mxu1 %v2222_v26  ;;  %v2226_v39 = vpack.c.bf16 %v186_v34, %v182_v33  ;;  %v188_v42 = vld [vmem:[#allocation9 + $0xc0] sm:$0xff]  ;;  %s3298_s8 = sld [smem:[#allocation5 + $0x6]]  ;;  %s121_s9 = scalar_lea.vmem [#allocation6], %s3277_s0 }
  0x62   :  { %2193 = vmatprep.subr.bf16.mxu0 %v2192_v27  ;;  %v2196_v40 = vpack.c.bf16 %v193_v37, %v189_v36  ;;  %v195_v41 = vld [vmem:[#allocation9 + $0xf8] sm:$0xff]  ;;  %v192_v43 = vld [vmem:[#allocation9 + $0xe0] sm:$0xff]  ;;  %2225 = vmatprep.subr.bf16.mxu1 %v2224_v31  ;;  %v190_v45 = vld [vmem:[#allocation9 + $0xd0] sm:$0xff]  ;;  %s3303_s10 = sld [smem:[#allocation5 + $0x86]]  ;;  %s3308_s2 = sld [smem:[#allocation5 + $0x7]] }
  0x63   :  { %v2228_v44 = vpack.c.bf16 %v195_v41, %v191_v38  ;;  %v194_v46 = vld [vmem:[#allocation9 + $0xf0] sm:$0xff]  ;;  %v197_v47 = vld [vmem:[#allocation9 + $0x108] sm:$0xff]  ;;  %v199_v49 = vld [vmem:[#allocation9 + $0x118] sm:$0xff]  ;;  %v2198_v51 = vpack.c.bf16 %v192_v43, %v188_v42  ;;  %s3313_s11 = sld [smem:[#allocation5 + $0x87]]  ;;  %s125_s3 = scalar_lea.vmem [#allocation6], %s3279_s19 }
  0x64   :  { %v201_v48 = vld [vmem:[#allocation9 + $0x128] sm:$0xff]  ;;  %v203_v50 = vld [vmem:[#allocation9 + $0x138] sm:$0xff]  ;;  %v2230_v52 = vpack.c.bf16 %v194_v46, %v190_v45  ;;  %v196_v54 = vld [vmem:[#allocation9 + $0x100] sm:$0xff]  ;;  %s129_s20 = scalar_lea.vmem [#allocation6], %s3283_s24  ;;  %s133_s21 = scalar_lea.vmem [#allocation6], %s3287_s25 }
  0x65   :  { %2195 = vmatpush1.bf16.msra.mxu0 %v2194_v35  ;;  %2227 = vmatpush1.bf16.msra.mxu1 %v2226_v39  ;;  %v2200_v53 = vpack.c.bf16 %v201_v48, %v197_v47  ;;  %v200_v55 = vld [vmem:[#allocation9 + $0x120] sm:$0xff]  ;;  %v198_v56 = vld [vmem:[#allocation9 + $0x110] sm:$0xff]  ;;  %v2232_v57 = vpack.c.bf16 %v203_v50, %v199_v49  ;;  %v205_v59 = vld [vmem:[#allocation9 + $0x148] sm:$0xff]  ;;  %s137_s12 = scalar_lea.vmem [#allocation6], %s3289_s27  ;;  %s3139_s0 = smov [#allocation14]  }
  0x66   :  { %2197 = vmatprep.subr.bf16.mxu0 %v2196_v40  ;;  %2229 = vmatprep.subr.bf16.mxu1 %v2228_v44  ;;  %v202_v58 = vld [vmem:[#allocation9 + $0x130] sm:$0xff]  ;;  %v209_v60 = vld [vmem:[#allocation9 + $0x168] sm:$0xff]  ;;  %v207_v61 = vld [vmem:[#allocation9 + $0x158] sm:$0xff]  ;;  %v2202_v63 = vpack.c.bf16 %v200_v55, %v196_v54  ;;  %s2111_s19 = sshll.u32 %s3139_s0, 4  ;;  %s2112_s19 = int_to_ptr.vmem [resolvable:$true] %s2111_s19 }
  0x67   :  { %v211_v62 = vld [vmem:[#allocation9 + $0x178] sm:$0xff]  ;;  %v2234_v1 = vpack.c.bf16 %v202_v58, %v198_v56  ;;  %v2204_v2 = vpack.c.bf16 %v209_v60, %v205_v59  ;;  %v204_v3 = vld [vmem:[#allocation9 + $0x140] sm:$0xff]  ;;  %v206_v5 = vld [vmem:[#allocation9 + $0x150] sm:$0xff]  ;;  %s141_s5 = scalar_lea.vmem [#allocation6], %s3298_s8  ;;  %p3100_p8 = scmp.lt.s32.totalorder %s2112_s19, %s2112_s19 }
  0x68   :  { %v208_v4 = vld [vmem:[#allocation9 + $0x160] sm:$0xff]  ;;  %v2236_v6 = vpack.c.bf16 %v211_v62, %v207_v61  ;;  %v210_v7 = vld [vmem:[#allocation9 + $0x170] sm:$0xff]  ;;  %v213_v8 = vld [vmem:[#allocation9 + $0x188] sm:$0xff]  ;;  %s145_s13 = scalar_lea.vmem [#allocation6], %s3303_s10  ;;  %s149_s14 = scalar_lea.vmem [#allocation6], %s3308_s2 }
  0x69   :  { %2199 = vmatpush1.bf16.msra.mxu0 %v2198_v51  ;;  %2231 = vmatpush1.bf16.msra.mxu1 %v2230_v52  ;;  %v217_v9 = vld [vmem:[#allocation9 + $0x1a8] sm:$0xff]  ;;  %v215_v10 = vld [vmem:[#allocation9 + $0x198] sm:$0xff]  ;;  %v2206_v12 = vpack.c.bf16 %v208_v4, %v204_v3  ;;  %v212_v13 = vld [vmem:[#allocation9 + $0x180] sm:$0xff]  ;;  %v2238_v15 = vpack.c.bf16 %v210_v7, %v206_v5  ;;  %s153_s15 = scalar_lea.vmem [#allocation6], %s3313_s11 }
  0x6a   :  { %2201 = vmatprep.subr.bf16.mxu0 %v2200_v53  ;;  %2233 = vmatprep.subr.bf16.mxu1 %v2232_v57  ;;  %v219_v11 = vld [vmem:[#allocation9 + $0x1b8] sm:$0xff]  ;;  %v216_v14 = vld [vmem:[#allocation9 + $0x1a0] sm:$0xff]  ;;  %v2208_v16 = vpack.c.bf16 %v217_v9, %v213_v8  ;;  %v214_v17 = vld [vmem:[#allocation9 + $0x190] sm:$0xff] }
  0x6b   :  { %v94_v18 = vld [vmem:[%s93_s22] sm:$0x1]  ;;  %v2240_v20 = vpack.c.bf16 %v219_v11, %v215_v10  ;;  %v218_v21 = vld [vmem:[#allocation9 + $0x1b0] sm:$0xff]  ;;  %v221_v22 = vld [vmem:[#allocation9 + $0x1c8] sm:$0xff]  ;;  %v2210_v26 = vpack.c.bf16 %v216_v14, %v212_v13  ;;  %s3095_s22 = scalar_lea.vmem %s2112_s19, 256 }
  0x6c   :  { %v98_v19 = vld [vmem:[%s97_s23] sm:$0x1]  ;;  %v225_v23 = vld [vmem:[#allocation9 + $0x1e8] sm:$0xff]  ;;  %95 = vst [vmem:[#allocation2] sm:$0x1] %v94_v18  ;;  %v220_v27 = vld [vmem:[#allocation9 + $0x1c0] sm:$0xff]  ;;  %v2242_v29 = vpack.c.bf16 %v218_v21, %v214_v17  ;;  %p3096_p7 = scmp.ne.s32.totalorder %s2112_s19, %s3095_s22  ;;  %p3101_p9 = scmp.lt.s32.totalorder %s3095_s22, %s3095_s22 }
  0x6d   :  { %2203 = vmatpush1.bf16.msra.mxu0 %v2202_v63  ;;  %2235 = vmatpush1.bf16.msra.mxu1 %v2234_v1  ;;  %99 = vst [vmem:[#allocation2 + $0x1] sm:$0x1] %v98_v19  ;;  %v223_v24 = vld [vmem:[#allocation9 + $0x1d8] sm:$0xff]  ;;  %v2212_v30 = vpack.c.bf16 %v225_v23, %v221_v22  ;;  %v224_v31 = vld [vmem:[#allocation9 + $0x1e0] sm:$0xff]  ;;  %v222_v32 = vld [vmem:[#allocation9 + $0x1d0] sm:$0xff] }
  0x6e   :  { %2205 = vmatprep.subr.bf16.mxu0 %v2204_v2  ;;  %2237 = vmatprep.subr.bf16.mxu1 %v2236_v6  ;;  %v227_v25 = vld [vmem:[#allocation9 + $0x1f8] sm:$0xff]  ;;  %v226_v35 = vld [vmem:[#allocation9 + $0x1f0] sm:$0xff]  ;;  %v516_v36 = vld [vmem:[#allocation11 + $0x8] sm:$0xff]  ;;  %v2214_v40 = vpack.c.bf16 %v224_v31, %v220_v27  ;;  %p3102_p10 = por %p3101_p9, %p3100_p8 }
  0x6f   :  { %v102_v28 = vld [vmem:[%s101_s26] sm:$0x1]  ;;  %v2244_v34 = vpack.c.bf16 %v227_v25, %v223_v24  ;;  %v520_v37 = vld [vmem:[#allocation11 + $0x28] sm:$0xff]  ;;  %v2246_v43 = vpack.c.bf16 %v226_v35, %v222_v32  ;;  %v515_v45 = vld [vmem:[#allocation11] sm:$0xff] }
  0x70   :  { %103 = vst [vmem:[#allocation2 + $0x8] sm:$0x1] %v102_v28  ;;  %v106_v33 = vld [vmem:[%s105_s1] sm:$0x1]  ;;  %v3293_v44 = vpack.c.bf16 %v520_v37, %v516_v36  ;;  %v519_v46 = vld [vmem:[#allocation11 + $0x20] sm:$0xff]  ;;  %v517_v48 = vld [vmem:[#allocation11 + $0x10] sm:$0xff]  ;;  %p3103_p11 = pnand %p3102_p10, %p3096_p7 }
  0x71   :  { %2207 = vmatpush1.bf16.msra.mxu0 %v2206_v12  ;;  %2239 = vmatpush1.bf16.msra.mxu1 %v2238_v15  ;;  %107 = vst [vmem:[#allocation2 + $0x9] sm:$0x1] %v106_v33  ;;  %v518_v38 = vld [vmem:[#allocation11 + $0x18] sm:$0xff]  ;;  %v521_v49 = vld [vmem:[#allocation11 + $0x30] sm:$0xff]  ;;  %v524_v50 = vld [vmem:[#allocation11 + $0x48] sm:$0xff]  ;;  %v3300_v55 = vpack.c.bf16 %v519_v46, %v515_v45 }
  0x72   :  { %2209 = vmatprep.subr.bf16.mxu0 %v2208_v16  ;;  %2241 = vmatprep.subr.bf16.mxu1 %v2240_v20  ;;  %v522_v39 = vld [vmem:[#allocation11 + $0x38] sm:$0xff]  ;;  %v528_v51 = vld [vmem:[#allocation11 + $0x68] sm:$0xff]  ;;  %v3306_v58 = vpack.c.bf16 %v521_v49, %v517_v48  ;;  %v523_v59 = vld [vmem:[#allocation11 + $0x40] sm:$0xff] }
  0x73   :  { %v110_v41 = vld [vmem:[%s109_s28] sm:$0x1]  ;;  %v3295_v47 = vpack.c.bf16 %v522_v39, %v518_v38  ;;  %v527_v60 = vld [vmem:[#allocation11 + $0x60] sm:$0xff]  ;;  %v3311_v61 = vpack.c.bf16 %v528_v51, %v524_v50  ;;  %v525_v62 = vld [vmem:[#allocation11 + $0x50] sm:$0xff] }
  0x74   :  { %v114_v42 = vld [vmem:[%s113_s29] sm:$0x1]  ;;  %111 = vst [vmem:[#allocation2 + $0x10] sm:$0x1] %v110_v41  ;;  %v156_v54 = vld [vmem:[#allocation2] sm:$0xff]  ;;  %v529_v63 = vld [vmem:[#allocation11 + $0x70] sm:$0xff]  ;;  %v3320_v7 = vpack.c.bf16 %v527_v60, %v523_v59 }
  0x75   :  { %2211 = vmatpush1.bf16.msra.mxu0 %v2210_v26  ;;  %2243 = vmatpush1.bf16.msra.mxu1 %v2242_v29  ;;  %115 = vst [vmem:[#allocation2 + $0x11] sm:$0x1] %v114_v42  ;;  %v526_v52 = vld [vmem:[#allocation11 + $0x58] sm:$0xff]  ;;  %v532_v1 = vld [vmem:[#allocation11 + $0x88] sm:$0xff]  ;;  %v3324_v10 = vpack.c.bf16 %v529_v63, %v525_v62  ;;  %v531_v11 = vld [vmem:[#allocation11 + $0x80] sm:$0xff] }
  0x76   :  { %2213 = vmatprep.subr.bf16.mxu0 %v2212_v30  ;;  %2245 = vmatprep.subr.bf16.mxu1 %v2244_v34  ;;  %v118_v53 = vld [vmem:[%s117_s30] sm:$0x1]  ;;  %v536_v3 = vld [vmem:[#allocation11 + $0xa8] sm:$0xff]  ;;  %v535_v12 = vld [vmem:[#allocation11 + $0xa0] sm:$0xff] }
  0x77   :  { %v530_v56 = vld [vmem:[#allocation11 + $0x78] sm:$0xff]  ;;  %119 = vst [vmem:[#allocation2 + $0x18] sm:$0x1] %v118_v53  ;;  %v3328_v13 = vpack.c.bf16 %v536_v3, %v532_v1  ;;  %v533_v14 = vld [vmem:[#allocation11 + $0x90] sm:$0xff]  ;;  %v540_v16 = vld [vmem:[#allocation11 + $0xc8] sm:$0xff]  ;;  %v3336_v22 = vpack.c.bf16 %v535_v12, %v531_v11 }
  0x78   :  { %v122_v57 = vld [vmem:[%s121_s9] sm:$0x1]  ;;  %v3315_v2 = vpack.c.bf16 %v530_v56, %v526_v52  ;;  %v157_v6 = vld [vmem:[#allocation2 + $0x8] sm:$0xff]  ;;  %v537_v15 = vld [vmem:[#allocation11 + $0xb0] sm:$0xff] }
  0x79   :  { %2215 = vmatpush1.bf16.msra.mxu0 %v2214_v40  ;;  %2247 = vmatpush1.bf16.msra.mxu1 %v2246_v43  ;;  %123 = vst [vmem:[#allocation2 + $0x19] sm:$0x1] %v122_v57  ;;  %v126_v4 = vld [vmem:[%s125_s3] sm:$0x1]  ;;  %v544_v18 = vld [vmem:[#allocation11 + $0xe8] sm:$0xff]  ;;  %v3340_v25 = vpack.c.bf16 %v537_v15, %v533_v14  ;;  %v539_v26 = vld [vmem:[#allocation11 + $0xc0] sm:$0xff] }
  0x7a   :  { %2249 = vmatprep.subr.bf16.mxu0 %v3293_v44  ;;  %2281 = vmatprep.subr.bf16.mxu1 %v3295_v47  ;;  %v130_v5 = vld [vmem:[%s129_s20] sm:$0x1]  ;;  %127 = vst [vmem:[#allocation2 + $0x20] sm:$0x1] %v126_v4  ;;  %v543_v27 = vld [vmem:[#allocation11 + $0xe0] sm:$0xff]  ;;  %v3344_v28 = vpack.c.bf16 %v544_v18, %v540_v16  ;;  %v541_v29 = vld [vmem:[#allocation11 + $0xd0] sm:$0xff] }
  0x7b   :  { %v534_v8 = vld [vmem:[#allocation11 + $0x98] sm:$0xff]  ;;  %131 = vst [vmem:[#allocation2 + $0x21] sm:$0x1] %v130_v5  ;;  %v545_v30 = vld [vmem:[#allocation11 + $0xf0] sm:$0xff]  ;;  %v548_v33 = vld [vmem:[#allocation11 + $0x108] sm:$0xff]  ;;  %v3352_v37 = vpack.c.bf16 %v543_v27, %v539_v26 }
  0x7c   :  { %315 = vmatmul.mubr.f32.vlgmr.msra.gmra.mrb[0].mxu0 %v156_v54  ;;  %428 = vmatmul.mubr.f32.vlgmr.msra.gmra.mrb[0].mxu1 %v156_v54  ;;  %v538_v9 = vld [vmem:[#allocation11 + $0xb8] sm:$0xff]  ;;  %v158_v21 = vld [vmem:[#allocation2 + $0x10] sm:$0xff]  ;;  %v552_v34 = vld [vmem:[#allocation11 + $0x128] sm:$0xff]  ;;  %v3356_v40 = vpack.c.bf16 %v545_v30, %v541_v29 }
  0x7d   :  { %2251 = vmatpush1.bf16.msra.mxu0 %v3300_v55  ;;  %2283 = vmatpush1.bf16.msra.mxu1 %v3306_v58  ;;  %v3331_v17 = vpack.c.bf16 %v538_v9, %v534_v8  ;;  %v134_v19 = vld [vmem:[%s133_s21] sm:$0x1]  ;;  %v547_v41 = vld [vmem:[#allocation11 + $0x100] sm:$0xff]  ;;  %v549_v43 = vld [vmem:[#allocation11 + $0x110] sm:$0xff]  ;;  %v3360_v45 = vpack.c.bf16 %v552_v34, %v548_v33 }
  0x7e   :  { %320 = vmatprep.mubr.f32.mxu0 %v3138_v0  ;;  %433 = vmatprep.mubr.f32.mxu1 %v3138_v0  ;;  %v138_v20 = vld [vmem:[%s137_s12] sm:$0x1]  ;;  %135 = vst [vmem:[#allocation2 + $0x28] sm:$0x1] %v134_v19  ;;  %v551_v42 = vld [vmem:[#allocation11 + $0x120] sm:$0xff]  ;;  %v553_v46 = vld [vmem:[#allocation11 + $0x130] sm:$0xff] }
  0x7f   :  { %2253 = vmatprep.subr.bf16.mxu0 %v3311_v61  ;;  %2285 = vmatprep.subr.bf16.mxu1 %v3315_v2  ;;  %v542_v23 = vld [vmem:[#allocation11 + $0xd8] sm:$0xff]  ;;  %139 = vst [vmem:[#allocation2 + $0x29] sm:$0x1] %v138_v20  ;;  %v556_v51 = vld [vmem:[#allocation11 + $0x148] sm:$0xff]  ;;  %v3368_v54 = vpack.c.bf16 %v551_v42, %v547_v41  ;;  %v3372_v59 = vpack.c.bf16 %v553_v46, %v549_v43  ;;  %v555_v60 = vld [vmem:[#allocation11 + $0x140] sm:$0xff]  ;;  %v230_v46 = vlaneseq }
  0x80   :  { %321 = vmatmul.mubr.f32.gmra.mrb[2].mxu0 %v157_v6  ;;  %434 = vmatmul.mubr.f32.gmra.mrb[2].mxu1 %v157_v6  ;;  %v546_v24 = vld [vmem:[#allocation11 + $0xf8] sm:$0xff]  ;;  %v560_v52 = vld [vmem:[#allocation11 + $0x168] sm:$0xff]  ;;  %v559_v62 = vld [vmem:[#allocation11 + $0x160] sm:$0xff] }
  0x81   :  { %2255 = vmatpush1.bf16.msra.mxu0 %v3320_v7  ;;  %2287 = vmatpush1.bf16.msra.mxu1 %v3324_v10  ;;  %v142_v31 = vld [vmem:[%s141_s5] sm:$0x1]  ;;  %v3348_v32 = vpack.c.bf16 %v546_v24, %v542_v23  ;;  %v3376_v63 = vpack.c.bf16 %v560_v52, %v556_v51  ;;  %v557_v1 = vld [vmem:[#allocation11 + $0x150] sm:$0xff]  ;;  %v564_v5 = vld [vmem:[#allocation11 + $0x188] sm:$0xff]  ;;  %v3382_v9 = vpack.c.bf16 %v559_v62, %v555_v60 }
  0x82   :  { %326 = vmatprep.mubr.f32.mxu0 %v3138_v0  ;;  %439 = vmatprep.mubr.f32.mxu1 %v3138_v0  ;;  %143 = vst [vmem:[#allocation2 + $0x30] sm:$0x1] %v142_v31  ;;  %v146_v35 = vld [vmem:[%s145_s13] sm:$0x1]  ;;  %v160_v53 = vld [vmem:[#allocation2 + $0x20] sm:$0xff]  ;;  %v561_v3 = vld [vmem:[#allocation11 + $0x170] sm:$0xff] }
  0x83   :  { %2257 = vmatprep.subr.bf16.mxu0 %v3328_v13  ;;  %2289 = vmatprep.subr.bf16.mxu1 %v3331_v17  ;;  %v159_v36 = vld [vmem:[#allocation2 + $0x18] sm:$0xff]  ;;  %147 = vst [vmem:[#allocation2 + $0x31] sm:$0x1] %v146_v35  ;;  %v568_v6 = vld [vmem:[#allocation11 + $0x1a8] sm:$0xff]  ;;  %v3386_v14 = vpack.c.bf16 %v561_v3, %v557_v1  ;;  %v563_v15 = vld [vmem:[#allocation11 + $0x180] sm:$0xff] }
  0x84   :  { %327 = vmatmul.mubr.f32.gmra.mrb[4].mxu0 %v158_v21  ;;  %440 = vmatmul.mubr.f32.gmra.mrb[4].mxu1 %v158_v21  ;;  %v550_v38 = vld [vmem:[#allocation11 + $0x118] sm:$0xff]  ;;  %v567_v16 = vld [vmem:[#allocation11 + $0x1a0] sm:$0xff]  ;;  %v3390_v18 = vpack.c.bf16 %v568_v6, %v564_v5  ;;  %v565_v19 = vld [vmem:[#allocation11 + $0x190] sm:$0xff] }
  0x85   :  { %2259 = vmatpush1.bf16.msra.mxu0 %v3336_v22  ;;  %v554_v39 = vld [vmem:[#allocation11 + $0x138] sm:$0xff]  ;;  %2291 = vmatpush1.bf16.msra.mxu1 %v3340_v25  ;;  %v569_v20 = vld [vmem:[#allocation11 + $0x1b0] sm:$0xff]  ;;  %v572_v23 = vld [vmem:[#allocation11 + $0x1c8] sm:$0xff]  ;;  %v3396_v27 = vpack.c.bf16 %v567_v16, %v563_v15 }
  0x86   :  { %332 = vmatprep.mubr.f32.mxu0 %v3138_v0  ;;  %445 = vmatprep.mubr.f32.mxu1 %v3138_v0  ;;  %v150_v48 = vld [vmem:[%s149_s14] sm:$0x1]  ;;  %v3365_v50 = vpack.c.bf16 %v554_v39, %v550_v38  ;;  %v161_v8 = vld [vmem:[#allocation2 + $0x28] sm:$0xff]  ;;  %v3400_v31 = vpack.c.bf16 %v569_v20, %v565_v19  ;;  %v571_v33 = vld [vmem:[#allocation11 + $0x1c0] sm:$0xff] }
  0x87   :  { %2261 = vmatprep.subr.bf16.mxu0 %v3344_v28  ;;  %v154_v49 = vld [vmem:[%s153_s15] sm:$0x1]  ;;  %2293 = vmatprep.subr.bf16.mxu1 %v3348_v32  ;;  %151 = vst [vmem:[#allocation2 + $0x38] sm:$0x1] %v150_v48  ;;  %v576_v24 = vld [vmem:[#allocation11 + $0x1e8] sm:$0xff]  ;;  %v575_v34 = vld [vmem:[#allocation11 + $0x1e0] sm:$0xff] }
  0x88   :  { %333 = vmatmul.mubr.f32.gmra.mrb[6].mxu0 %v159_v36  ;;  %155 = vst [vmem:[#allocation2 + $0x39] sm:$0x1] %v154_v49  ;;  %446 = vmatmul.mubr.f32.gmra.mrb[6].mxu1 %v159_v36  ;;  %v558_v56 = vld [vmem:[#allocation11 + $0x158] sm:$0xff]  ;;  %v3404_v35 = vpack.c.bf16 %v576_v24, %v572_v23  ;;  %v573_v36 = vld [vmem:[#allocation11 + $0x1d0] sm:$0xff]  ;;  %v3410_v42 = vpack.c.bf16 %v575_v34, %v571_v33  ;;  %v3461_v48 = vshrl.u32 %v230_v46, 7 }
  0x89   :  { %2263 = vmatpush1.bf16.msra.mxu0 %v3352_v37  ;;  %v562_v57 = vld [vmem:[#allocation11 + $0x178] sm:$0xff]  ;;  %2295 = vmatpush1.bf16.msra.mxu1 %v3356_v40  ;;  %v577_v38 = vld [vmem:[#allocation11 + $0x1f0] sm:$0xff] }
  0x8a   :  { %338 = vmatprep.mubr.f32.mxu0 %v3138_v0  ;;  %451 = vmatprep.mubr.f32.mxu1 %v3138_v0  ;;  %v3379_v4 = vpack.c.bf16 %v562_v57, %v558_v56  ;;  %v566_v11 = vld [vmem:[#allocation11 + $0x198] sm:$0xff]  ;;  %v162_v26 = vld [vmem:[#allocation2 + $0x30] sm:$0xff]  ;;  %v3414_v43 = vpack.c.bf16 %v577_v38, %v573_v36  ;;  %v232_v49 = vsub.s32 0, %v3461_v48  ;;  %v236_v52 = vsub.s32 1, %v3461_v48 }
  0x8b   :  { %2265 = vmatprep.subr.bf16.mxu0 %v3360_v45  ;;  %2297 = vmatprep.subr.bf16.mxu1 %v3365_v50  ;;  %v570_v12 = vld [vmem:[#allocation11 + $0x1b8] sm:$0xff]  ;;  %v244_v60 = vsub.s32 3, %v3461_v48  ;;  %v240_v15 = vsub.s32 2, %v3461_v48 }
  0x8c   :  { %339 = vmatmul.mubr.f32.gmra.mrb[8].mxu0 %v160_v53  ;;  %452 = vmatmul.mubr.f32.gmra.mrb[8].mxu1 %v160_v53  ;;  %v3393_v21 = vpack.c.bf16 %v570_v12, %v566_v11  ;;  %v574_v29 = vld [vmem:[#allocation11 + $0x1d8] sm:$0xff] }
  0x8d   :  { %2267 = vmatpush1.bf16.msra.mxu0 %v3368_v54  ;;  %2299 = vmatpush1.bf16.msra.mxu1 %v3372_v59  ;;  %v578_v30 = vld [vmem:[#allocation11 + $0x1f8] sm:$0xff] }
  0x8e   :  { %344 = vmatprep.mubr.f32.mxu0 %v3138_v0  ;;  %457 = vmatprep.mubr.f32.mxu1 %v3138_v0  ;;  %v3407_v39 = vpack.c.bf16 %v578_v30, %v574_v29  ;;  %v228_v51 = vld [vmem:[%s3768_s4] sm:$0xf] }
  0x8f   :  { %2269 = vmatprep.subr.bf16.mxu0 %v3376_v63  ;;  %2301 = vmatprep.subr.bf16.mxu1 %v3379_v4  ;;  %v163_v41 = vld [vmem:[#allocation2 + $0x38] sm:$0xff]  ;;  %v3470_v53 = vrot.slane %v228_v51, %v232_v49  ;;  %v3474_v56 = vrot.slane %v228_v51, %v236_v52  ;;  %v3479_v12 = vrot.slane %v228_v51, %v244_v60 }
  0x90   :  { %345 = vmatmul.mubr.f32.gmra.mrb[10].mxu0 %v161_v8  ;;  %458 = vmatmul.mubr.f32.gmra.mrb[10].mxu1 %v161_v8  ;;  %v3483_v19 = vrot.slane %v228_v51, %v240_v15 }
  0x91   :  { %2271 = vmatpush1.bf16.msra.mxu0 %v3382_v9  ;;  %2303 = vmatpush1.bf16.msra.mxu1 %v3386_v14 }
  0x92   :  { %350 = vmatprep.mubr.f32.mxu0 %v3138_v0  ;;  %463 = vmatprep.mubr.f32.mxu1 %v3138_v0 }
  0x93   :  { %2273 = vmatprep.subr.bf16.mxu0 %v3390_v18  ;;  %2305 = vmatprep.subr.bf16.mxu1 %v3393_v21 }
  0x94   :  { %351 = vmatmul.mubr.f32.gmra.mrb[12].mxu0 %v162_v26  ;;  %464 = vmatmul.mubr.f32.gmra.mrb[12].mxu1 %v162_v26 }
  0x95   :  { %2275 = vmatpush1.bf16.msra.mxu0 %v3396_v27  ;;  %2307 = vmatpush1.bf16.msra.mxu1 %v3400_v31 }
  0x96   :  { %356 = vmatprep.mubr.f32.mxu0 %v3138_v0  ;;  %469 = vmatprep.mubr.f32.mxu1 %v3138_v0 }
  0x97   :  { %2277 = vmatprep.subr.bf16.mxu0 %v3404_v35  ;;  %2309 = vmatprep.subr.bf16.mxu1 %v3407_v39 }
  0x98   :  { %357 = vmatmul.mubr.f32.gmra.mrb[14].mxu0 %v163_v41  ;;  %470 = vmatmul.mubr.f32.gmra.mrb[14].mxu1 %v163_v41 }
  0x99   :  { %2279 = vmatpush1.bf16.msra.mxu0 %v3410_v42  ;;  %2311 = vmatpush1.bf16.msra.mxu1 %v3414_v43 }
  0x9a   :  { %643 = vmatprep.mubr.f32.mxu0 %v3138_v0  ;;  %714 = vmatprep.mubr.f32.mxu1 %v3138_v0 }
  0x9b   :  { %2313 = vmatprep.subr.bf16.mxu0 %v3293_v44  ;;  %2345 = vmatprep.subr.bf16.mxu1 %v3295_v47 }
  0x9c   :  { %644 = vmatmul.mubr.f32.vlgmr.msra.gmra.mrb[0].mxu0 %v3138_v0  ;;  %715 = vmatmul.mubr.f32.vlgmr.msra.gmra.mrb[0].mxu1 %v3138_v0 }
  0x9d   :  { %2315 = vmatpush1.bf16.msra.mxu0 %v3300_v55  ;;  %2347 = vmatpush1.bf16.msra.mxu1 %v3306_v58 }
  0x9e   :  { %2317 = vmatprep.subr.bf16.mxu0 %v3311_v61  ;;  %2349 = vmatprep.subr.bf16.mxu1 %v3315_v2 }
  0x9f   :  { %820 = vmatprep.mubr.f32.mxu0 %v3138_v0  ;;  %891 = vmatprep.mubr.f32.mxu1 %v3138_v0 }
  0xa1   :  { %2319 = vmatpush1.bf16.msra.mxu0 %v3320_v7  ;;  %2351 = vmatpush1.bf16.msra.mxu1 %v3324_v10 }
  0xa2   :  { %2321 = vmatprep.subr.bf16.mxu0 %v3328_v13  ;;  %2353 = vmatprep.subr.bf16.mxu1 %v3331_v17 }
  0xa5   :  { %2323 = vmatpush1.bf16.msra.mxu0 %v3336_v22  ;;  %2355 = vmatpush1.bf16.msra.mxu1 %v3340_v25 }
  0xa6   :  { %2325 = vmatprep.subr.bf16.mxu0 %v3344_v28  ;;  %2357 = vmatprep.subr.bf16.mxu1 %v3348_v32 }
  0xa9   :  { %2327 = vmatpush1.bf16.msra.mxu0 %v3352_v37  ;;  %2359 = vmatpush1.bf16.msra.mxu1 %v3356_v40 }
  0xaa   :  { %2329 = vmatprep.subr.bf16.mxu0 %v3360_v45  ;;  %2361 = vmatprep.subr.bf16.mxu1 %v3365_v50 }
  0xad   :  { %2331 = vmatpush1.bf16.msra.mxu0 %v3368_v54  ;;  %2363 = vmatpush1.bf16.msra.mxu1 %v3372_v59 }
  0xae   :  { %2333 = vmatprep.subr.bf16.mxu0 %v3376_v63  ;;  %2365 = vmatprep.subr.bf16.mxu1 %v3379_v4 }
  0xb1   :  { %2335 = vmatpush1.bf16.msra.mxu0 %v3382_v9  ;;  %2367 = vmatpush1.bf16.msra.mxu1 %v3386_v14 }
  0xb2   :  { %2337 = vmatprep.subr.bf16.mxu0 %v3390_v18  ;;  %2369 = vmatprep.subr.bf16.mxu1 %v3393_v21 }
  0xb5   :  { %2339 = vmatpush1.bf16.msra.mxu0 %v3396_v27  ;;  %2371 = vmatpush1.bf16.msra.mxu1 %v3400_v31 }
  0xb6   :  { %2341 = vmatprep.subr.bf16.mxu0 %v3404_v35  ;;  %2373 = vmatprep.subr.bf16.mxu1 %v3407_v39 }
  0xb9   :  { %2343 = vmatpush1.bf16.msra.mxu0 %v3410_v42  ;;  %2375 = vmatpush1.bf16.msra.mxu1 %v3414_v43 }
  0xba   :  { %2377 = vmatprep.subr.bf16.mxu0 %v3293_v44  ;;  %2409 = vmatprep.subr.bf16.mxu1 %v3295_v47 }
 0x16f   :  { %v645_v57 = vpop.f32.mrb[0].mxu0  ;;  %v716_v1 = vpop.f32.mrb[0].mxu1 }
 0x170   :  { %v2792_v62 = vadd.f32 %v645_v57, %v3470_v53  ;;  %v647_v3 = vpop.f32.mrb[1].mxu0  ;;  %v718_v6 = vpop.f32.mrb[1].mxu1  ;;  %v2808_v23 = vadd.f32 %v716_v1, %v3483_v19 }
 0x171   :  { %v2793_v5 = vadd.f32 %v647_v3, %v3474_v56  ;;  %v2809_v16 = vadd.f32 %v718_v6, %v3479_v12 }
 0x172   :  { %v2160_v8 = vmul.f32 -1.442695, %v2792_v62 }
 0x173   :  { %v2161_v11 = vmul.f32 -1.442695, %v2793_v5  ;;  %v2162_v20 = vmul.f32 -1.442695, %v2809_v16 }
 0x174   :  { %2869 = vpow2.f32 %v2160_v8 }
 0x175   :  { %2871 = vpow2.f32 %v2161_v11 }
 0x176   :  { %2873 = vpow2.f32 %v2162_v20 }
 0x177   :  { %2875 = vtanh.f32 %v2808_v23 }
 0x17e   :  { %v2870_v24 = vpop.eup %2869 }
 0x17f   :  { %v2872_v26 = vpop.eup %2871  ;;  %v728_v29 = vadd.f32 1.0, %v2870_v24 }
 0x180   :  { %v734_v30 = vadd.f32 1.0, %v2872_v26  ;;  %v2874_v33 = vpop.eup %2873 }
 0x181   :  { %2877 = vrcp.f32 %v728_v29  ;;  %v2876_v34 = vpop.eup %2875  ;;  %v741_v46 = vadd.f32 1.0, %v2874_v33 }
 0x182   :  { %2879 = vrcp.f32 %v734_v30 }
 0x183   :  { %2881 = vrcp.f32 %v741_v46 }
 0x18b   :  { %v2878_v36 = vpop.eup %2877 }
 0x18c   :  { %v2880_v38 = vpop.eup %2879  ;;  %v745_v41 = vmul.f32 %v2878_v36, %v2876_v34 }
 0x18d   :  { %v744_v57 = vmul.f32 0.0, %v2880_v38  ;;  %v2882_v60 = vpop.eup %2881 }
 0x18f   :  { %v3486_v51 = vadd.f32 %v745_v41, %v744_v57 }
 0x191   :  { %2883 = vtanh.f32 %v3486_v51 }
 0x19b   :  { %v2884_v62 = vpop.eup %2883 }
 0x19c   :  { %v748_v1 = vmul.f32 %v2884_v62, %v2882_v60 }
 0x19e   :  { %821 = vmatmul.mubr.f32.vlgmr.msra.gmra.mrb[2].mxu0 %v748_v1  ;;  %892 = vmatmul.mubr.f32.vlgmr.msra.gmra.mrb[2].mxu1 %v748_v1 }
 0x19f   :  { %2379 = vmatpush1.bf16.msra.mxu0 %v3300_v55  ;;  %2411 = vmatpush1.bf16.msra.mxu1 %v3306_v58 }
 0x1a0   :  { %2381 = vmatprep.subr.bf16.mxu0 %v3311_v61  ;;  %2413 = vmatprep.subr.bf16.mxu1 %v3315_v2 }
 0x1a1   :  { %997 = vmatprep.mubr.f32.mxu0 %v3138_v0  ;;  %1068 = vmatprep.mubr.f32.mxu1 %v3138_v0 }
 0x1a3   :  { %2383 = vmatpush1.bf16.msra.mxu0 %v3320_v7  ;;  %2415 = vmatpush1.bf16.msra.mxu1 %v3324_v10 }
 0x1a4   :  { %2385 = vmatprep.subr.bf16.mxu0 %v3328_v13  ;;  %2417 = vmatprep.subr.bf16.mxu1 %v3331_v17 }
 0x1a7   :  { %2387 = vmatpush1.bf16.msra.mxu0 %v3336_v22  ;;  %2419 = vmatpush1.bf16.msra.mxu1 %v3340_v25 }
 0x1a8   :  { %2389 = vmatprep.subr.bf16.mxu0 %v3344_v28  ;;  %2421 = vmatprep.subr.bf16.mxu1 %v3348_v32 }
 0x1ab   :  { %2391 = vmatpush1.bf16.msra.mxu0 %v3352_v37  ;;  %2423 = vmatpush1.bf16.msra.mxu1 %v3356_v40 }
 0x1ac   :  { %2393 = vmatprep.subr.bf16.mxu0 %v3360_v45  ;;  %2425 = vmatprep.subr.bf16.mxu1 %v3365_v50 }
 0x1af   :  { %2395 = vmatpush1.bf16.msra.mxu0 %v3368_v54  ;;  %2427 = vmatpush1.bf16.msra.mxu1 %v3372_v59 }
 0x1b0   :  { %2397 = vmatprep.subr.bf16.mxu0 %v3376_v63  ;;  %2429 = vmatprep.subr.bf16.mxu1 %v3379_v4 }
 0x1b3   :  { %2399 = vmatpush1.bf16.msra.mxu0 %v3382_v9  ;;  %2431 = vmatpush1.bf16.msra.mxu1 %v3386_v14 }
 0x1b4   :  { %2401 = vmatprep.subr.bf16.mxu0 %v3390_v18  ;;  %2433 = vmatprep.subr.bf16.mxu1 %v3393_v21 }
 0x1b7   :  { %2403 = vmatpush1.bf16.msra.mxu0 %v3396_v27  ;;  %2435 = vmatpush1.bf16.msra.mxu1 %v3400_v31 }
 0x1b8   :  { %2405 = vmatprep.subr.bf16.mxu0 %v3404_v35  ;;  %2437 = vmatprep.subr.bf16.mxu1 %v3407_v39 }
 0x1bb   :  { %2407 = vmatpush1.bf16.msra.mxu0 %v3410_v42  ;;  %2439 = vmatpush1.bf16.msra.mxu1 %v3414_v43 }
 0x1bc   :  { %2441 = vmatprep.subr.bf16.mxu0 %v3293_v44  ;;  %2473 = vmatprep.subr.bf16.mxu1 %v3295_v47 }
 0x271   :  { %v822_v3 = vpop.f32.mrb[2].mxu0  ;;  %v893_v5 = vpop.f32.mrb[2].mxu1 }
 0x272   :  { %v2794_v6 = vadd.f32 %v822_v3, %v3470_v53  ;;  %v824_v8 = vpop.f32.mrb[3].mxu0  ;;  %v895_v11 = vpop.f32.mrb[3].mxu1  ;;  %v2810_v26 = vadd.f32 %v893_v5, %v3483_v19 }
 0x273   :  { %v2795_v15 = vadd.f32 %v824_v8, %v3474_v56  ;;  %v2811_v23 = vadd.f32 %v895_v11, %v3479_v12 }
 0x274   :  { %v2163_v16 = vmul.f32 -1.442695, %v2794_v6 }
 0x275   :  { %v2164_v20 = vmul.f32 -1.442695, %v2795_v15  ;;  %v2165_v24 = vmul.f32 -1.442695, %v2811_v23 }
 0x276   :  { %2885 = vpow2.f32 %v2163_v16 }
 0x277   :  { %2887 = vpow2.f32 %v2164_v20 }
 0x278   :  { %2889 = vpow2.f32 %v2165_v24 }
 0x279   :  { %2891 = vtanh.f32 %v2810_v26 }
 0x280   :  { %v2886_v29 = vpop.eup %2885 }
 0x281   :  { %v2888_v30 = vpop.eup %2887  ;;  %v905_v33 = vadd.f32 1.0, %v2886_v29 }
 0x282   :  { %v911_v34 = vadd.f32 1.0, %v2888_v30  ;;  %v2890_v36 = vpop.eup %2889 }
 0x283   :  { %2893 = vrcp.f32 %v905_v33  ;;  %v2892_v38 = vpop.eup %2891  ;;  %v918_v60 = vadd.f32 1.0, %v2890_v36 }
 0x284   :  { %2895 = vrcp.f32 %v911_v34 }
 0x285   :  { %2897 = vrcp.f32 %v918_v60 }
 0x28d   :  { %v2894_v41 = vpop.eup %2893 }
 0x28e   :  { %v2896_v46 = vpop.eup %2895  ;;  %v922_v57 = vmul.f32 %v2894_v41, %v2892_v38 }
 0x28f   :  { %v921_v62 = vmul.f32 %v2896_v46, %v3486_v51  ;;  %v2898_v3 = vpop.eup %2897 }
 0x291   :  { %v3528_v1 = vadd.f32 %v922_v57, %v921_v62 }
 0x293   :  { %2899 = vtanh.f32 %v3528_v1 }
 0x29d   :  { %v2900_v5 = vpop.eup %2899 }
 0x29e   :  { %v925_v6 = vmul.f32 %v2900_v5, %v2898_v3 }
 0x2a0   :  { %998 = vmatmul.mubr.f32.vlgmr.msra.gmra.mrb[4].mxu0 %v925_v6  ;;  %1069 = vmatmul.mubr.f32.vlgmr.msra.gmra.mrb[4].mxu1 %v925_v6 }
 0x2a1   :  { %2443 = vmatpush1.bf16.msra.mxu0 %v3300_v55  ;;  %2475 = vmatpush1.bf16.msra.mxu1 %v3306_v58 }
 0x2a2   :  { %2445 = vmatprep.subr.bf16.mxu0 %v3311_v61  ;;  %2477 = vmatprep.subr.bf16.mxu1 %v3315_v2 }
 0x2a3   :  { %1174 = vmatprep.mubr.f32.mxu0 %v3138_v0  ;;  %1245 = vmatprep.mubr.f32.mxu1 %v3138_v0 }
 0x2a5   :  { %2447 = vmatpush1.bf16.msra.mxu0 %v3320_v7  ;;  %2479 = vmatpush1.bf16.msra.mxu1 %v3324_v10 }
 0x2a6   :  { %2449 = vmatprep.subr.bf16.mxu0 %v3328_v13  ;;  %2481 = vmatprep.subr.bf16.mxu1 %v3331_v17 }
 0x2a9   :  { %2451 = vmatpush1.bf16.msra.mxu0 %v3336_v22  ;;  %2483 = vmatpush1.bf16.msra.mxu1 %v3340_v25 }
 0x2aa   :  { %2453 = vmatprep.subr.bf16.mxu0 %v3344_v28  ;;  %2485 = vmatprep.subr.bf16.mxu1 %v3348_v32 }
 0x2ad   :  { %2455 = vmatpush1.bf16.msra.mxu0 %v3352_v37  ;;  %2487 = vmatpush1.bf16.msra.mxu1 %v3356_v40 }
 0x2ae   :  { %2457 = vmatprep.subr.bf16.mxu0 %v3360_v45  ;;  %2489 = vmatprep.subr.bf16.mxu1 %v3365_v50 }
 0x2b1   :  { %2459 = vmatpush1.bf16.msra.mxu0 %v3368_v54  ;;  %2491 = vmatpush1.bf16.msra.mxu1 %v3372_v59 }
 0x2b2   :  { %2461 = vmatprep.subr.bf16.mxu0 %v3376_v63  ;;  %2493 = vmatprep.subr.bf16.mxu1 %v3379_v4 }
 0x2b5   :  { %2463 = vmatpush1.bf16.msra.mxu0 %v3382_v9  ;;  %2495 = vmatpush1.bf16.msra.mxu1 %v3386_v14 }
 0x2b6   :  { %2465 = vmatprep.subr.bf16.mxu0 %v3390_v18  ;;  %2497 = vmatprep.subr.bf16.mxu1 %v3393_v21 }
 0x2b9   :  { %2467 = vmatpush1.bf16.msra.mxu0 %v3396_v27  ;;  %2499 = vmatpush1.bf16.msra.mxu1 %v3400_v31 }
 0x2ba   :  { %2469 = vmatprep.subr.bf16.mxu0 %v3404_v35  ;;  %2501 = vmatprep.subr.bf16.mxu1 %v3407_v39 }
 0x2bd   :  { %2471 = vmatpush1.bf16.msra.mxu0 %v3410_v42  ;;  %2503 = vmatpush1.bf16.msra.mxu1 %v3414_v43 }
 0x2be   :  { %2505 = vmatprep.subr.bf16.mxu0 %v3293_v44  ;;  %2537 = vmatprep.subr.bf16.mxu1 %v3295_v47 }
 0x373   :  { %v999_v51 = vpop.f32.mrb[4].mxu0  ;;  %v1070_v8 = vpop.f32.mrb[4].mxu1 }
 0x374   :  { %v2796_v11 = vadd.f32 %v999_v51, %v3470_v53  ;;  %v1001_v15 = vpop.f32.mrb[5].mxu0  ;;  %v1072_v16 = vpop.f32.mrb[5].mxu1  ;;  %v2812_v30 = vadd.f32 %v1070_v8, %v3483_v19 }
 0x375   :  { %v2797_v20 = vadd.f32 %v1001_v15, %v3474_v56  ;;  %v2813_v26 = vadd.f32 %v1072_v16, %v3479_v12 }
 0x376   :  { %v2166_v23 = vmul.f32 -1.442695, %v2796_v11 }
 0x377   :  { %v2167_v24 = vmul.f32 -1.442695, %v2797_v20  ;;  %v2168_v29 = vmul.f32 -1.442695, %v2813_v26 }
 0x378   :  { %2901 = vpow2.f32 %v2166_v23 }
 0x379   :  { %2903 = vpow2.f32 %v2167_v24 }
 0x37a   :  { %2905 = vpow2.f32 %v2168_v29 }
 0x37b   :  { %2907 = vtanh.f32 %v2812_v30 }
 0x382   :  { %v2902_v33 = vpop.eup %2901 }
 0x383   :  { %v2904_v34 = vpop.eup %2903  ;;  %v1082_v36 = vadd.f32 1.0, %v2902_v33 }
 0x384   :  { %v1088_v38 = vadd.f32 1.0, %v2904_v34  ;;  %v2906_v41 = vpop.eup %2905 }
 0x385   :  { %2909 = vrcp.f32 %v1082_v36  ;;  %v2908_v46 = vpop.eup %2907  ;;  %v1095_v3 = vadd.f32 1.0, %v2906_v41 }
 0x386   :  { %2911 = vrcp.f32 %v1088_v38 }
 0x387   :  { %2913 = vrcp.f32 %v1095_v3 }
 0x38f   :  { %v2910_v57 = vpop.eup %2909 }
 0x390   :  { %v2912_v60 = vpop.eup %2911  ;;  %v1099_v62 = vmul.f32 %v2910_v57, %v2908_v46 }
 0x391   :  { %v1098_v5 = vmul.f32 %v2912_v60, %v3528_v1  ;;  %v2914_v51 = vpop.eup %2913 }
 0x393   :  { %v3570_v6 = vadd.f32 %v1099_v62, %v1098_v5 }
 0x395   :  { %2915 = vtanh.f32 %v3570_v6 }
 0x39f   :  { %v2916_v8 = vpop.eup %2915 }
 0x3a0   :  { %v1102_v11 = vmul.f32 %v2916_v8, %v2914_v51 }
 0x3a2   :  { %1175 = vmatmul.mubr.f32.vlgmr.msra.gmra.mrb[6].mxu0 %v1102_v11  ;;  %1246 = vmatmul.mubr.f32.vlgmr.msra.gmra.mrb[6].mxu1 %v1102_v11 }
 0x3a3   :  { %2507 = vmatpush1.bf16.msra.mxu0 %v3300_v55  ;;  %2539 = vmatpush1.bf16.msra.mxu1 %v3306_v58 }
 0x3a4   :  { %2509 = vmatprep.subr.bf16.mxu0 %v3311_v61  ;;  %2541 = vmatprep.subr.bf16.mxu1 %v3315_v2 }
 0x3a5   :  { %1351 = vmatprep.mubr.f32.mxu0 %v3138_v0  ;;  %1422 = vmatprep.mubr.f32.mxu1 %v3138_v0 }
 0x3a7   :  { %2511 = vmatpush1.bf16.msra.mxu0 %v3320_v7  ;;  %2543 = vmatpush1.bf16.msra.mxu1 %v3324_v10 }
 0x3a8   :  { %2513 = vmatprep.subr.bf16.mxu0 %v3328_v13  ;;  %2545 = vmatprep.subr.bf16.mxu1 %v3331_v17 }
 0x3ab   :  { %2515 = vmatpush1.bf16.msra.mxu0 %v3336_v22  ;;  %2547 = vmatpush1.bf16.msra.mxu1 %v3340_v25 }
 0x3ac   :  { %2517 = vmatprep.subr.bf16.mxu0 %v3344_v28  ;;  %2549 = vmatprep.subr.bf16.mxu1 %v3348_v32 }
 0x3af   :  { %2519 = vmatpush1.bf16.msra.mxu0 %v3352_v37  ;;  %2551 = vmatpush1.bf16.msra.mxu1 %v3356_v40 }
 0x3b0   :  { %2521 = vmatprep.subr.bf16.mxu0 %v3360_v45  ;;  %2553 = vmatprep.subr.bf16.mxu1 %v3365_v50 }
 0x3b3   :  { %2523 = vmatpush1.bf16.msra.mxu0 %v3368_v54  ;;  %2555 = vmatpush1.bf16.msra.mxu1 %v3372_v59 }
 0x3b4   :  { %2525 = vmatprep.subr.bf16.mxu0 %v3376_v63  ;;  %2557 = vmatprep.subr.bf16.mxu1 %v3379_v4 }
 0x3b7   :  { %2527 = vmatpush1.bf16.msra.mxu0 %v3382_v9  ;;  %2559 = vmatpush1.bf16.msra.mxu1 %v3386_v14 }
 0x3b8   :  { %2529 = vmatprep.subr.bf16.mxu0 %v3390_v18  ;;  %2561 = vmatprep.subr.bf16.mxu1 %v3393_v21 }
 0x3bb   :  { %2531 = vmatpush1.bf16.msra.mxu0 %v3396_v27  ;;  %2563 = vmatpush1.bf16.msra.mxu1 %v3400_v31 }
 0x3bc   :  { %2533 = vmatprep.subr.bf16.mxu0 %v3404_v35  ;;  %2565 = vmatprep.subr.bf16.mxu1 %v3407_v39 }
 0x3bf   :  { %2535 = vmatpush1.bf16.msra.mxu0 %v3410_v42  ;;  %2567 = vmatpush1.bf16.msra.mxu1 %v3414_v43 }
 0x3c0   :  { %2569 = vmatprep.subr.bf16.mxu0 %v3293_v44  ;;  %2601 = vmatprep.subr.bf16.mxu1 %v3295_v47 }
 0x475   :  { %v1176_v1 = vpop.f32.mrb[6].mxu0  ;;  %v1247_v15 = vpop.f32.mrb[6].mxu1 }
 0x476   :  { %v2798_v16 = vadd.f32 %v1176_v1, %v3470_v53  ;;  %v1178_v20 = vpop.f32.mrb[7].mxu0  ;;  %v1249_v23 = vpop.f32.mrb[7].mxu1  ;;  %v2814_v34 = vadd.f32 %v1247_v15, %v3483_v19 }
 0x477   :  { %v2799_v24 = vadd.f32 %v1178_v20, %v3474_v56  ;;  %v2815_v30 = vadd.f32 %v1249_v23, %v3479_v12 }
 0x478   :  { %v2169_v26 = vmul.f32 -1.442695, %v2798_v16 }
 0x479   :  { %v2170_v29 = vmul.f32 -1.442695, %v2799_v24  ;;  %v2171_v33 = vmul.f32 -1.442695, %v2815_v30 }
 0x47a   :  { %2917 = vpow2.f32 %v2169_v26 }
 0x47b   :  { %2919 = vpow2.f32 %v2170_v29 }
 0x47c   :  { %2921 = vpow2.f32 %v2171_v33 }
 0x47d   :  { %2923 = vtanh.f32 %v2814_v34 }
 0x484   :  { %v2918_v36 = vpop.eup %2917 }
 0x485   :  { %v2920_v38 = vpop.eup %2919  ;;  %v1259_v41 = vadd.f32 1.0, %v2918_v36 }
 0x486   :  { %v1265_v46 = vadd.f32 1.0, %v2920_v38  ;;  %v2922_v57 = vpop.eup %2921 }
 0x487   :  { %2925 = vrcp.f32 %v1259_v41  ;;  %v2924_v60 = vpop.eup %2923  ;;  %v1272_v51 = vadd.f32 1.0, %v2922_v57 }
 0x488   :  { %2927 = vrcp.f32 %v1265_v46 }
 0x489   :  { %2929 = vrcp.f32 %v1272_v51 }
 0x491   :  { %v2926_v62 = vpop.eup %2925 }
 0x492   :  { %v2928_v3 = vpop.eup %2927  ;;  %v1276_v5 = vmul.f32 %v2926_v62, %v2924_v60 }
 0x493   :  { %v1275_v8 = vmul.f32 %v2928_v3, %v3570_v6  ;;  %v2930_v1 = vpop.eup %2929 }
 0x495   :  { %v3612_v11 = vadd.f32 %v1276_v5, %v1275_v8 }
 0x497   :  { %2931 = vtanh.f32 %v3612_v11 }
 0x4a1   :  { %v2932_v15 = vpop.eup %2931 }
 0x4a2   :  { %v1279_v16 = vmul.f32 %v2932_v15, %v2930_v1 }
 0x4a4   :  { %1352 = vmatmul.mubr.f32.vlgmr.msra.gmra.mrb[8].mxu0 %v1279_v16  ;;  %1423 = vmatmul.mubr.f32.vlgmr.msra.gmra.mrb[8].mxu1 %v1279_v16 }
 0x4a5   :  { %2571 = vmatpush1.bf16.msra.mxu0 %v3300_v55  ;;  %2603 = vmatpush1.bf16.msra.mxu1 %v3306_v58 }
 0x4a6   :  { %2573 = vmatprep.subr.bf16.mxu0 %v3311_v61  ;;  %2605 = vmatprep.subr.bf16.mxu1 %v3315_v2 }
 0x4a7   :  { %1528 = vmatprep.mubr.f32.mxu0 %v3138_v0  ;;  %1599 = vmatprep.mubr.f32.mxu1 %v3138_v0 }
 0x4a9   :  { %2575 = vmatpush1.bf16.msra.mxu0 %v3320_v7  ;;  %2607 = vmatpush1.bf16.msra.mxu1 %v3324_v10 }
 0x4aa   :  { %2577 = vmatprep.subr.bf16.mxu0 %v3328_v13  ;;  %2609 = vmatprep.subr.bf16.mxu1 %v3331_v17 }
 0x4ad   :  { %2579 = vmatpush1.bf16.msra.mxu0 %v3336_v22  ;;  %2611 = vmatpush1.bf16.msra.mxu1 %v3340_v25 }
 0x4ae   :  { %2581 = vmatprep.subr.bf16.mxu0 %v3344_v28  ;;  %2613 = vmatprep.subr.bf16.mxu1 %v3348_v32 }
 0x4b1   :  { %2583 = vmatpush1.bf16.msra.mxu0 %v3352_v37  ;;  %2615 = vmatpush1.bf16.msra.mxu1 %v3356_v40 }
 0x4b2   :  { %2585 = vmatprep.subr.bf16.mxu0 %v3360_v45  ;;  %2617 = vmatprep.subr.bf16.mxu1 %v3365_v50 }
 0x4b5   :  { %2587 = vmatpush1.bf16.msra.mxu0 %v3368_v54  ;;  %2619 = vmatpush1.bf16.msra.mxu1 %v3372_v59 }
 0x4b6   :  { %2589 = vmatprep.subr.bf16.mxu0 %v3376_v63  ;;  %2621 = vmatprep.subr.bf16.mxu1 %v3379_v4 }
 0x4b9   :  { %2591 = vmatpush1.bf16.msra.mxu0 %v3382_v9  ;;  %2623 = vmatpush1.bf16.msra.mxu1 %v3386_v14 }
 0x4ba   :  { %2593 = vmatprep.subr.bf16.mxu0 %v3390_v18  ;;  %2625 = vmatprep.subr.bf16.mxu1 %v3393_v21 }
 0x4bd   :  { %2595 = vmatpush1.bf16.msra.mxu0 %v3396_v27  ;;  %2627 = vmatpush1.bf16.msra.mxu1 %v3400_v31 }
 0x4be   :  { %2597 = vmatprep.subr.bf16.mxu0 %v3404_v35  ;;  %2629 = vmatprep.subr.bf16.mxu1 %v3407_v39 }
 0x4c1   :  { %2599 = vmatpush1.bf16.msra.mxu0 %v3410_v42  ;;  %2631 = vmatpush1.bf16.msra.mxu1 %v3414_v43 }
 0x4c2   :  { %2633 = vmatprep.subr.bf16.mxu0 %v3293_v44  ;;  %2665 = vmatprep.subr.bf16.mxu1 %v3295_v47 }
 0x577   :  { %v1353_v6 = vpop.f32.mrb[8].mxu0  ;;  %v1424_v20 = vpop.f32.mrb[8].mxu1 }
 0x578   :  { %v2800_v23 = vadd.f32 %v1353_v6, %v3470_v53  ;;  %v1355_v24 = vpop.f32.mrb[9].mxu0  ;;  %v1426_v26 = vpop.f32.mrb[9].mxu1  ;;  %v2816_v38 = vadd.f32 %v1424_v20, %v3483_v19 }
 0x579   :  { %v2801_v29 = vadd.f32 %v1355_v24, %v3474_v56  ;;  %v2817_v34 = vadd.f32 %v1426_v26, %v3479_v12 }
 0x57a   :  { %v2172_v30 = vmul.f32 -1.442695, %v2800_v23 }
 0x57b   :  { %v2173_v33 = vmul.f32 -1.442695, %v2801_v29  ;;  %v2174_v36 = vmul.f32 -1.442695, %v2817_v34 }
 0x57c   :  { %2933 = vpow2.f32 %v2172_v30 }
 0x57d   :  { %2935 = vpow2.f32 %v2173_v33 }
 0x57e   :  { %2937 = vpow2.f32 %v2174_v36 }
 0x57f   :  { %2939 = vtanh.f32 %v2816_v38 }
 0x586   :  { %v2934_v41 = vpop.eup %2933 }
 0x587   :  { %v2936_v46 = vpop.eup %2935  ;;  %v1436_v57 = vadd.f32 1.0, %v2934_v41 }
 0x588   :  { %v1442_v60 = vadd.f32 1.0, %v2936_v46  ;;  %v2938_v62 = vpop.eup %2937 }
 0x589   :  { %2941 = vrcp.f32 %v1436_v57  ;;  %v2940_v3 = vpop.eup %2939  ;;  %v1449_v1 = vadd.f32 1.0, %v2938_v62 }
 0x58a   :  { %2943 = vrcp.f32 %v1442_v60 }
 0x58b   :  { %2945 = vrcp.f32 %v1449_v1 }
 0x593   :  { %v2942_v5 = vpop.eup %2941 }
 0x594   :  { %v2944_v51 = vpop.eup %2943  ;;  %v1453_v8 = vmul.f32 %v2942_v5, %v2940_v3 }
 0x595   :  { %v1452_v15 = vmul.f32 %v2944_v51, %v3612_v11  ;;  %v2946_v6 = vpop.eup %2945 }
 0x597   :  { %v3654_v16 = vadd.f32 %v1453_v8, %v1452_v15 }
 0x599   :  { %2947 = vtanh.f32 %v3654_v16 }
 0x5a3   :  { %v2948_v20 = vpop.eup %2947 }
 0x5a4   :  { %v1456_v23 = vmul.f32 %v2948_v20, %v2946_v6 }
 0x5a6   :  { %1529 = vmatmul.mubr.f32.vlgmr.msra.gmra.mrb[10].mxu0 %v1456_v23  ;;  %1600 = vmatmul.mubr.f32.vlgmr.msra.gmra.mrb[10].mxu1 %v1456_v23 }
 0x5a7   :  { %2635 = vmatpush1.bf16.msra.mxu0 %v3300_v55  ;;  %2667 = vmatpush1.bf16.msra.mxu1 %v3306_v58 }
 0x5a8   :  { %2637 = vmatprep.subr.bf16.mxu0 %v3311_v61  ;;  %2669 = vmatprep.subr.bf16.mxu1 %v3315_v2 }
 0x5a9   :  { %1705 = vmatprep.mubr.f32.mxu0 %v3138_v0  ;;  %1776 = vmatprep.mubr.f32.mxu1 %v3138_v0 }
 0x5ab   :  { %2639 = vmatpush1.bf16.msra.mxu0 %v3320_v7  ;;  %2671 = vmatpush1.bf16.msra.mxu1 %v3324_v10 }
 0x5ac   :  { %2641 = vmatprep.subr.bf16.mxu0 %v3328_v13  ;;  %2673 = vmatprep.subr.bf16.mxu1 %v3331_v17 }
 0x5af   :  { %2643 = vmatpush1.bf16.msra.mxu0 %v3336_v22  ;;  %2675 = vmatpush1.bf16.msra.mxu1 %v3340_v25 }
 0x5b0   :  { %2645 = vmatprep.subr.bf16.mxu0 %v3344_v28  ;;  %2677 = vmatprep.subr.bf16.mxu1 %v3348_v32 }
 0x5b3   :  { %2647 = vmatpush1.bf16.msra.mxu0 %v3352_v37  ;;  %2679 = vmatpush1.bf16.msra.mxu1 %v3356_v40 }
 0x5b4   :  { %2649 = vmatprep.subr.bf16.mxu0 %v3360_v45  ;;  %2681 = vmatprep.subr.bf16.mxu1 %v3365_v50 }
 0x5b7   :  { %2651 = vmatpush1.bf16.msra.mxu0 %v3368_v54  ;;  %2683 = vmatpush1.bf16.msra.mxu1 %v3372_v59 }
 0x5b8   :  { %2653 = vmatprep.subr.bf16.mxu0 %v3376_v63  ;;  %2685 = vmatprep.subr.bf16.mxu1 %v3379_v4 }
 0x5bb   :  { %2655 = vmatpush1.bf16.msra.mxu0 %v3382_v9  ;;  %2687 = vmatpush1.bf16.msra.mxu1 %v3386_v14 }
 0x5bc   :  { %2657 = vmatprep.subr.bf16.mxu0 %v3390_v18  ;;  %2689 = vmatprep.subr.bf16.mxu1 %v3393_v21 }
 0x5bf   :  { %2659 = vmatpush1.bf16.msra.mxu0 %v3396_v27  ;;  %2691 = vmatpush1.bf16.msra.mxu1 %v3400_v31 }
 0x5c0   :  { %2661 = vmatprep.subr.bf16.mxu0 %v3404_v35  ;;  %2693 = vmatprep.subr.bf16.mxu1 %v3407_v39 }
 0x5c3   :  { %2663 = vmatpush1.bf16.msra.mxu0 %v3410_v42  ;;  %2695 = vmatpush1.bf16.msra.mxu1 %v3414_v43 }
 0x5c4   :  { %2697 = vmatprep.subr.bf16.mxu0 %v3293_v44  ;;  %2729 = vmatprep.subr.bf16.mxu1 %v3295_v47 }
 0x679   :  { %v1530_v11 = vpop.f32.mrb[10].mxu0  ;;  %v1601_v24 = vpop.f32.mrb[10].mxu1 }
 0x67a   :  { %v2802_v26 = vadd.f32 %v1530_v11, %v3470_v53  ;;  %v1532_v29 = vpop.f32.mrb[11].mxu0  ;;  %v1603_v30 = vpop.f32.mrb[11].mxu1  ;;  %v2818_v46 = vadd.f32 %v1601_v24, %v3483_v19 }
 0x67b   :  { %v2803_v33 = vadd.f32 %v1532_v29, %v3474_v56  ;;  %v2819_v38 = vadd.f32 %v1603_v30, %v3479_v12  ;;  %v1995_v29 = vld [vmem:[#allocation12 + $0x38] sm:$0xff] }
 0x67c   :  { %v2175_v34 = vmul.f32 -1.442695, %v2802_v26  ;;  %v1993_v26 = vld [vmem:[#allocation12 + $0x28] sm:$0xff] }
 0x67d   :  { %v2176_v36 = vmul.f32 -1.442695, %v2803_v33  ;;  %v2177_v41 = vmul.f32 -1.442695, %v2819_v38  ;;  %v2764_v30 = vpack.c.bf16 %v1995_v29, %v1993_v26  ;;  %v1992_v33 = vld [vmem:[#allocation12 + $0x20] sm:$0xff]  ;;  %v1997_v38 = vld [vmem:[#allocation12 + $0x48] sm:$0xff] }
 0x67e   :  { %2949 = vpow2.f32 %v2175_v34  ;;  %v1994_v34 = vld [vmem:[#allocation12 + $0x30] sm:$0xff] }
 0x67f   :  { %2951 = vpow2.f32 %v2176_v36  ;;  %v2766_v36 = vpack.c.bf16 %v1994_v34, %v1992_v33 }
 0x680   :  { %2953 = vpow2.f32 %v2177_v41  ;;  %v1999_v41 = vld [vmem:[#allocation12 + $0x58] sm:$0xff] }
 0x681   :  { %2955 = vtanh.f32 %v2818_v46  ;;  %v2768_v46 = vpack.c.bf16 %v1999_v41, %v1997_v38 }
 0x688   :  { %v2950_v44 = vpop.eup %2949 }
 0x689   :  { %v2952_v57 = vpop.eup %2951  ;;  %v1613_v47 = vadd.f32 1.0, %v2950_v44  ;;  %v1998_v44 = vld [vmem:[#allocation12 + $0x50] sm:$0xff] }
 0x68a   :  { %v1619_v60 = vadd.f32 1.0, %v2952_v57  ;;  %v2954_v62 = vpop.eup %2953 }
 0x68b   :  { %2957 = vrcp.f32 %v1613_v47  ;;  %v2956_v3 = vpop.eup %2955  ;;  %v1626_v1 = vadd.f32 1.0, %v2954_v62  ;;  %v2001_v47 = vld [vmem:[#allocation12 + $0x68] sm:$0xff] }
 0x68c   :  { %2959 = vrcp.f32 %v1619_v60  ;;  %v2003_v60 = vld [vmem:[#allocation12 + $0x78] sm:$0xff] }
 0x68d   :  { %2961 = vrcp.f32 %v1626_v1  ;;  %v2772_v62 = vpack.c.bf16 %v2003_v60, %v2001_v47  ;;  %v2007_v1 = vld [vmem:[#allocation12 + $0x98] sm:$0xff] }
 0x695   :  { %v2958_v5 = vpop.eup %2957 }
 0x696   :  { %v2960_v51 = vpop.eup %2959  ;;  %v1630_v8 = vmul.f32 %v2958_v5, %v2956_v3  ;;  %v2000_v3 = vld [vmem:[#allocation12 + $0x60] sm:$0xff]  ;;  %v2002_v5 = vld [vmem:[#allocation12 + $0x70] sm:$0xff] }
 0x697   :  { %v1629_v15 = vmul.f32 %v2960_v51, %v3654_v16  ;;  %v2962_v20 = vpop.eup %2961  ;;  %v1990_v16 = vld [vmem:[#allocation12 + $0x10] sm:$0xff]  ;;  %v2774_v51 = vpack.c.bf16 %v2002_v5, %v2000_v3 }
 0x699   :  { %v3696_v6 = vadd.f32 %v1630_v8, %v1629_v15  ;;  %v2005_v8 = vld [vmem:[#allocation12 + $0x88] sm:$0xff] }
 0x69a   :  { %v2776_v15 = vpack.c.bf16 %v2007_v1, %v2005_v8 }
 0x69b   :  { %2963 = vtanh.f32 %v3696_v6 }
 0x6a5   :  { %v2964_v23 = vpop.eup %2963 }
 0x6a6   :  { %v1633_v11 = vmul.f32 %v2964_v23, %v2962_v20  ;;  %v2006_v20 = vld [vmem:[#allocation12 + $0x90] sm:$0xff] }
 0x6a8   :  { %1706 = vmatmul.mubr.f32.vlgmr.msra.gmra.mrb[12].mxu0 %v1633_v11  ;;  %1777 = vmatmul.mubr.f32.vlgmr.msra.gmra.mrb[12].mxu1 %v1633_v11  ;;  %v2009_v11 = vld [vmem:[#allocation12 + $0xa8] sm:$0xff] }
 0x6a9   :  { %2699 = vmatpush1.bf16.msra.mxu0 %v3300_v55  ;;  %2731 = vmatpush1.bf16.msra.mxu1 %v3306_v58 }
 0x6aa   :  { %2701 = vmatprep.subr.bf16.mxu0 %v3311_v61  ;;  %2733 = vmatprep.subr.bf16.mxu1 %v3315_v2 }
 0x6ab   :  { %1882 = vmatprep.mubr.f32.mxu0 %v3138_v0  ;;  %1953 = vmatprep.mubr.f32.mxu1 %v3138_v0 }
 0x6ad   :  { %2703 = vmatpush1.bf16.msra.mxu0 %v3320_v7  ;;  %2735 = vmatpush1.bf16.msra.mxu1 %v3324_v10 }
 0x6ae   :  { %2705 = vmatprep.subr.bf16.mxu0 %v3328_v13  ;;  %2737 = vmatprep.subr.bf16.mxu1 %v3331_v17 }
 0x6b1   :  { %2707 = vmatpush1.bf16.msra.mxu0 %v3336_v22  ;;  %2739 = vmatpush1.bf16.msra.mxu1 %v3340_v25 }
 0x6b2   :  { %2709 = vmatprep.subr.bf16.mxu0 %v3344_v28  ;;  %2741 = vmatprep.subr.bf16.mxu1 %v3348_v32 }
 0x6b5   :  { %2711 = vmatpush1.bf16.msra.mxu0 %v3352_v37  ;;  %2743 = vmatpush1.bf16.msra.mxu1 %v3356_v40 }
 0x6b6   :  { %2713 = vmatprep.subr.bf16.mxu0 %v3360_v45  ;;  %2745 = vmatprep.subr.bf16.mxu1 %v3365_v50 }
 0x6b9   :  { %2715 = vmatpush1.bf16.msra.mxu0 %v3368_v54  ;;  %2747 = vmatpush1.bf16.msra.mxu1 %v3372_v59 }
 0x6ba   :  { %2717 = vmatprep.subr.bf16.mxu0 %v3376_v63  ;;  %2749 = vmatprep.subr.bf16.mxu1 %v3379_v4 }
 0x6bd   :  { %2719 = vmatpush1.bf16.msra.mxu0 %v3382_v9  ;;  %2751 = vmatpush1.bf16.msra.mxu1 %v3386_v14 }
 0x6be   :  { %2721 = vmatprep.subr.bf16.mxu0 %v3390_v18  ;;  %2753 = vmatprep.subr.bf16.mxu1 %v3393_v21 }
 0x6c1   :  { %2723 = vmatpush1.bf16.msra.mxu0 %v3396_v27  ;;  %2755 = vmatpush1.bf16.msra.mxu1 %v3400_v31 }
 0x6c2   :  { %2725 = vmatprep.subr.bf16.mxu0 %v3404_v35  ;;  %2757 = vmatprep.subr.bf16.mxu1 %v3407_v39  ;;  %v1989_v35 = vld [vmem:[#allocation12 + $0x8] sm:$0xff]  ;;  %v1991_v39 = vld [vmem:[#allocation12 + $0x18] sm:$0xff] }
 0x6c5   :  { %2727 = vmatpush1.bf16.msra.mxu0 %v3410_v42  ;;  %2759 = vmatpush1.bf16.msra.mxu1 %v3414_v43  ;;  %v2760_v42 = vpack.c.bf16 %v1991_v39, %v1989_v35  ;;  %v1988_v43 = vld [vmem:[#allocation12] sm:$0xff] }
 0x6c6   :  { %v2762_v24 = vpack.c.bf16 %v1990_v16, %v1988_v43 }
 0x6c7   :  { %2761 = vmatprep.subr.bf16.mxu0 %v2760_v42 }
 0x77b   :  { %v1707_v55 = vpop.f32.mrb[12].mxu0  ;;  %v1778_v58 = vpop.f32.mrb[12].mxu1 }
 0x77c   :  { %v2804_v61 = vadd.f32 %v1707_v55, %v3470_v53  ;;  %v1709_v2 = vpop.f32.mrb[13].mxu0  ;;  %v1780_v7 = vpop.f32.mrb[13].mxu1  ;;  %v2820_v28 = vadd.f32 %v1778_v58, %v3483_v19  ;;  %v2011_v55 = vld [vmem:[#allocation12 + $0xb8] sm:$0xff] }
 0x77d   :  { %v2805_v10 = vadd.f32 %v1709_v2, %v3474_v56  ;;  %v2821_v22 = vadd.f32 %v1780_v7, %v3479_v12  ;;  %v2780_v58 = vpack.c.bf16 %v2011_v55, %v2009_v11  ;;  %v2010_v2 = vld [vmem:[#allocation12 + $0xb0] sm:$0xff]  ;;  %v2013_v7 = vld [vmem:[#allocation12 + $0xc8] sm:$0xff] }
 0x77e   :  { %v2178_v13 = vmul.f32 -1.442695, %v2804_v61  ;;  %v2008_v61 = vld [vmem:[#allocation12 + $0xa0] sm:$0xff] }
 0x77f   :  { %v2179_v17 = vmul.f32 -1.442695, %v2805_v10  ;;  %v2180_v25 = vmul.f32 -1.442695, %v2821_v22  ;;  %v2782_v10 = vpack.c.bf16 %v2010_v2, %v2008_v61  ;;  %v2014_v22 = vld [vmem:[#allocation12 + $0xd0] sm:$0xff] }
 0x780   :  { %2965 = vpow2.f32 %v2178_v13  ;;  %v2015_v13 = vld [vmem:[#allocation12 + $0xd8] sm:$0xff] }
 0x781   :  { %2967 = vpow2.f32 %v2179_v17  ;;  %v2012_v17 = vld [vmem:[#allocation12 + $0xc0] sm:$0xff] }
 0x782   :  { %2969 = vpow2.f32 %v2180_v25  ;;  %v2784_v25 = vpack.c.bf16 %v2015_v13, %v2013_v7 }
 0x783   :  { %2971 = vtanh.f32 %v2820_v28  ;;  %v2017_v28 = vld [vmem:[#allocation12 + $0xe8] sm:$0xff] }
 0x78a   :  { %v2966_v32 = vpop.eup %2965 }
 0x78b   :  { %v2968_v37 = vpop.eup %2967  ;;  %v1790_v40 = vadd.f32 1.0, %v2966_v32  ;;  %v2019_v32 = vld [vmem:[#allocation12 + $0xf8] sm:$0xff] }
 0x78c   :  { %v1796_v45 = vadd.f32 1.0, %v2968_v37  ;;  %v2970_v50 = vpop.eup %2969  ;;  %v2786_v37 = vpack.c.bf16 %v2014_v22, %v2012_v17 }
 0x78d   :  { %2973 = vrcp.f32 %v1790_v40  ;;  %v2972_v54 = vpop.eup %2971  ;;  %v1803_v9 = vadd.f32 1.0, %v2970_v50  ;;  %v2788_v40 = vpack.c.bf16 %v2019_v32, %v2017_v28  ;;  %v2018_v50 = vld [vmem:[#allocation12 + $0xf0] sm:$0xff] }
 0x78e   :  { %2975 = vrcp.f32 %v1796_v45  ;;  %v2016_v45 = vld [vmem:[#allocation12 + $0xe0] sm:$0xff] }
 0x78f   :  { %2977 = vrcp.f32 %v1803_v9 }
 0x797   :  { %v2974_v59 = vpop.eup %2973 }
 0x798   :  { %v2976_v63 = vpop.eup %2975  ;;  %v1807_v4 = vmul.f32 %v2974_v59, %v2972_v54  ;;  %v2790_v54 = vpack.c.bf16 %v2018_v50, %v2016_v45 }
 0x799   :  { %v1806_v14 = vmul.f32 %v2976_v63, %v3696_v6  ;;  %v2978_v21 = vpop.eup %2977  ;;  %v2004_v6 = vld [vmem:[#allocation12 + $0x80] sm:$0xff] }
 0x79a   :  { %v2778_v23 = vpack.c.bf16 %v2006_v20, %v2004_v6 }
 0x79b   :  { %v3736_v18 = vadd.f32 %v1807_v4, %v1806_v14 }
 0x79d   :  { %2979 = vtanh.f32 %v3736_v18 }
 0x7a7   :  { %v2980_v27 = vpop.eup %2979 }
 0x7a8   :  { %v1810_v31 = vmul.f32 %v2980_v27, %v2978_v21 }
 0x7aa   :  { %1883 = vmatmul.mubr.f32.vlgmr.msra.gmra.mrb[14].mxu0 %v1810_v31  ;;  %1954 = vmatmul.mubr.f32.vlgmr.msra.gmra.mrb[14].mxu1 %v1810_v31 }
 0x7ab   :  { %2096 = vmatprep.mubr.f32.mxu0 %v3138_v0  ;;  %2763 = vmatpush1.bf16.msra.mxu0 %v2762_v24  ;;  %v1996_v0 = vld [vmem:[#allocation12 + $0x40] sm:$0xff] }
 0x7ac   :  { %2765 = vmatprep.subr.bf16.mxu0 %v2764_v30  ;;  %v2770_v57 = vpack.c.bf16 %v1998_v44, %v1996_v0 }
 0x7af   :  { %2767 = vmatpush1.bf16.msra.mxu0 %v2766_v36 }
 0x7b0   :  { %2769 = vmatprep.subr.bf16.mxu0 %v2768_v46  ;;  %v2020_v46 = vld [vmem:[%s3770_s6] sm:$0x3] }
 0x7b1   :  { %v2025_v0 = vrot.slane %v2020_v46, %v232_v49  ;;  %v2029_v44 = vrot.slane %v2020_v46, %v236_v52 }
 0x7b3   :  { %2771 = vmatpush1.bf16.msra.mxu0 %v2770_v57 }
 0x7b4   :  { %2773 = vmatprep.subr.bf16.mxu0 %v2772_v62 }
 0x7b7   :  { %2775 = vmatpush1.bf16.msra.mxu0 %v2774_v51 }
 0x7b8   :  { %2777 = vmatprep.subr.bf16.mxu0 %v2776_v15 }
 0x7bb   :  { %2779 = vmatpush1.bf16.msra.mxu0 %v2778_v23 }
 0x7bc   :  { %2781 = vmatprep.subr.bf16.mxu0 %v2780_v58 }
 0x7bf   :  { %2783 = vmatpush1.bf16.msra.mxu0 %v2782_v10 }
 0x7c0   :  { %2785 = vmatprep.subr.bf16.mxu0 %v2784_v25 }
 0x7c3   :  { %2787 = vmatpush1.bf16.msra.mxu0 %v2786_v37 }
 0x7c4   :  { %2789 = vmatprep.subr.bf16.mxu0 %v2788_v40 }
 0x7c7   :  { %2791 = vmatpush1.bf16.msra.mxu0 %v2790_v54 }
 0x87d   :  { %v1884_v59 = vpop.f32.mrb[14].mxu0  ;;  %v1955_v63 = vpop.f32.mrb[14].mxu1 }
 0x87e   :  { %v2806_v4 = vadd.f32 %v1884_v59, %v3470_v53  ;;  %v1886_v9 = vpop.f32.mrb[15].mxu0  ;;  %v1957_v14 = vpop.f32.mrb[15].mxu1  ;;  %v2822_v42 = vadd.f32 %v1955_v63, %v3483_v19 }
 0x87f   :  { %v2807_v21 = vadd.f32 %v1886_v9, %v3474_v56  ;;  %v2823_v35 = vadd.f32 %v1957_v14, %v3479_v12 }
 0x880   :  { %v2181_v27 = vmul.f32 -1.442695, %v2806_v4 }
 0x881   :  { %v2182_v31 = vmul.f32 -1.442695, %v2807_v21  ;;  %v2183_v39 = vmul.f32 -1.442695, %v2823_v35 }
 0x882   :  { %2981 = vpow2.f32 %v2181_v27 }
 0x883   :  { %2983 = vpow2.f32 %v2182_v31 }
 0x884   :  { %2985 = vpow2.f32 %v2183_v39 }
 0x885   :  { %2987 = vtanh.f32 %v2822_v42 }
 0x88c   :  { %v2982_v43 = vpop.eup %2981 }
 0x88d   :  { %v2984_v16 = vpop.eup %2983  ;;  %v1967_v24 = vadd.f32 1.0, %v2982_v43 }
 0x88e   :  { %v1973_v26 = vadd.f32 1.0, %v2984_v16  ;;  %v2986_v53 = vpop.eup %2985 }
 0x88f   :  { %2989 = vrcp.f32 %v1967_v24  ;;  %v2988_v29 = vpop.eup %2987  ;;  %v1980_v34 = vadd.f32 1.0, %v2986_v53 }
 0x890   :  { %2991 = vrcp.f32 %v1973_v26 }
 0x891   :  { %2993 = vrcp.f32 %v1980_v34 }
 0x899   :  { %v2990_v56 = vpop.eup %2989 }
 0x89a   :  { %v2992_v30 = vpop.eup %2991  ;;  %v1984_v33 = vmul.f32 %v2990_v56, %v2988_v29 }
 0x89b   :  { %v1983_v36 = vmul.f32 %v2992_v30, %v3736_v18  ;;  %v2994_v19 = vpop.eup %2993 }
 0x89d   :  { %v1985_v12 = vadd.f32 %v1984_v33, %v1983_v36 }
 0x89f   :  { %2995 = vtanh.f32 %v1985_v12 }
 0x8a9   :  { %v2996_v38 = vpop.eup %2995 }
 0x8aa   :  { %v1987_v41 = vmul.f32 %v2996_v38, %v2994_v19 }
 0x8ac   :  { %2097 = vmatmul.mubr.f32.vlgmr.msra.gmra.mrb[16].mxu0 %v1987_v41 }
 0x97f   :  { %v2098_v18 = vpop.f32.mrb[16].mxu0 }
 0x980   :  { %v2099_v57 = vadd.f32 %v2098_v18, %v2025_v0  ;;  %v2100_v47 = vpop.f32.mrb[17].mxu0 }
 0x981   :  { %v2101_v60 = vadd.f32 %v2100_v47, %v2029_v44 }
 0x982   :  { %2103 = vst [vmem:[#allocation14] sm:$0xff] %v2099_v57 }
 0x983   :  { %2104 = vst [vmem:[#allocation14 + $0x8] sm:$0xff] %v2101_v60 }
 0x984   :  { %3106 = shalt.err (!%p3103_p11)
}
 0x985   :  { %s3107_s24 = scalar_lea.hbm %s3771_s7, 256 }
 0x986   :  { %p3108_p12 = scmp.ne.s32.totalorder %s3771_s7, %s3107_s24  ;;  %p3111_p13 = scmp.lt.u32.totalorder %s3107_s24, %s3771_s7 }
 0x988   :  { %p3113_p0 = pnand %p3111_p13, %p3108_p12 }
 0x98a   :  { %3116 = shalt.err (!%p3113_p0)
}
 0x98b   :  { %2114 = dma.vmem_to_hbm [thread:$0]  %s2112_s19, 256, %s3771_s7, [#allocation8]  }
 0x98c   :  { %3125 = dma.done.wait [#allocation8], 256  }
 0x98d   :  { %3126 = vsyncadd [#allocation8], 4294967040 }
 0x98e   :  { %2118 = vsyncpa [#allocation7], 1 }
 0x98f   :  { %2119 = vsyncpa [#allocation10], 1 }
 0x990   :  { %2120 = vsyncpa [#allocation13], 1 }
 0x991   :  { %2121 = vsyncpa [#allocation8], 1 }

</bundles_post_ra>
